<compile_context>
chip_gen: v6e
topology: v6e:2x2x1
jax: 0.10.0
libtpu: 0.0.40
codegen_flags: <defaults>
</compile_context>

<pallas_src>
import functools

import jax
import jax.numpy as jnp
from jax.experimental import pallas as pl
from jax.experimental.pallas import tpu as pltpu

INPUT_DIM = 2
HIDDEN = 64
NUM_LAYERS = 2   # layer structure is explicit (layer-0 feeds layer-1 per timestep)
BATCH = 2
SEQ = 8


def _lstm_regressor_kernel(
    xs_ref,                       # (T*B, D_in)  time-major flattened input
    w_ih0_ref, b0_ref,            # layer-0 input projection (D_in, 4H), (1, 4H)
    w_h0f_ref,                    # fused [w_hh0_T | w_ih1_T]  (H, 8H)
    w_hh1_ref, b1_ref,            # layer-1 recurrence (H, 4H), (1, 4H)
    fc1_w_ref, fc1_b_ref,         # Linear(H, H//2)
    fc2_w_ref, fc2_b_ref,         # Linear(H//2, 1)
    out_ref,                      # (B, 1)
    *, B, T, H,
):
    H4 = 4 * H

    w_h0f = w_h0f_ref[...]                                    # (H, 8H)
    w_hh1 = w_hh1_ref[...]                                    # (H, 4H)
    # Hoisted bias broadcast (JAX does not CSE broadcast_in_dim inside loops).
    b1 = jnp.broadcast_to(b1_ref[...], (B, H4))               # (B, 4H)

    # --- hoisted layer-0 input projection for ALL timesteps, b0 folded in ----
    xproj = (
        jnp.dot(xs_ref[...], w_ih0_ref[...], preferred_element_type=jnp.float32)
        + b0_ref[...]
    )                                                         # (T*B, 4H)

    def activate(gates, c):
        # Two full-width EUP passes; gate extraction is VPU-only slicing.
        sig = jax.nn.sigmoid(gates)                           # (B, 4H)
        tnh = jnp.tanh(gates)                                 # (B, 4H)
        i = sig[:, 0 * H:1 * H]
        f = sig[:, 1 * H:2 * H]
        g = tnh[:, 2 * H:3 * H]
        o = sig[:, 3 * H:4 * H]
        c_new = f * c + i * g
        h_new = o * jnp.tanh(c_new)
        return h_new, c_new

    zeros_g = jnp.zeros((B, H4), jnp.float32)
    zeros_h = jnp.zeros((B, H), jnp.float32)
    rec0 = zeros_g        # h0_{t-1} @ w_hh0_T
    rec1 = zeros_g        # h1_{t-1} @ w_hh1_T
    c0 = zeros_h
    c1 = zeros_h
    h1 = zeros_h

    # Fully unrolled recurrence (T static, tiny live state) so layer-1(t) can
    # overlap with layer-0(t+1).
    for t in range(T):
        # ---- layer 0 cell (input projection precomputed) ----
        gates0 = xproj[t * B:(t + 1) * B, :] + rec0
        h0, c0 = activate(gates0, c0)

        # One fused MXU push: [next-step layer-0 recurrence | layer-1 input].
        fused = jnp.dot(h0, w_h0f, preferred_element_type=jnp.float32)  # (B, 8H)
        rec0 = fused[:, :H4]

        # ---- layer 1 cell ----
        gates1 = fused[:, H4:] + rec1 + b1
        h1, c1 = activate(gates1, c1)
        if t + 1 < T:
            rec1 = jnp.dot(h1, w_hh1, preferred_element_type=jnp.float32)

    # ---- fc head on the last timestep's top-layer hidden state ----
    # TODO(synk): nn.Dropout layers are treated as identity (eval-mode semantics).
    z = jnp.dot(h1, fc1_w_ref[...], preferred_element_type=jnp.float32) + fc1_b_ref[...]
    z = jnp.maximum(z, 0.0)                                   # ReLU
    y = jnp.dot(z, fc2_w_ref[...], preferred_element_type=jnp.float32) + fc2_b_ref[...]
    out_ref[...] = y                                          # (B, 1)


def lstm_regressor_forward(x, params):
    """x: (B, T, INPUT_DIM) float32 -> (B,) float32."""
    B, T, D = x.shape
    (w_ih0_T, w_hh0_T, b0, w_ih1_T, w_hh1_T, b1,
     fc1_w_T, fc1_b, fc2_w_T, fc2_b) = params
    H = w_hh0_T.shape[0]

    # Host-side weight fusion: layer-1's input projection and layer-0's
    # next-step recurrence both multiply h0_t -> single (H, 8H) operand.
    w_h0_fused = jnp.concatenate([w_hh0_T, w_ih1_T], axis=1)          # (H, 8H)
    # Time-major, flattened input for the hoisted projection; per-step access
    # inside the kernel becomes a static leading-row-block slice.
    xs = jnp.transpose(x, (1, 0, 2)).reshape(T * B, D)                # (T*B, D)

    kernel = functools.partial(_lstm_regressor_kernel, B=B, T=T, H=H)
    inputs = (xs, w_ih0_T, b0, w_h0_fused, w_hh1_T, b1,
              fc1_w_T, fc1_b, fc2_w_T, fc2_b)

    out = pl.pallas_call(
        kernel,
        out_shape=jax.ShapeDtypeStruct((B, 1), jnp.float32),
        in_specs=[pl.BlockSpec(memory_space=pltpu.MemorySpace.VMEM)] * len(inputs),
        out_specs=pl.BlockSpec(memory_space=pltpu.MemorySpace.VMEM),
    )(*inputs)
    return out[:, 0]  # squeeze(-1)


# ----------------------- parameter construction (deterministic) -----------------------

def init_params(key, input_dim=INPUT_DIM, hidden=HIDDEN):
    k = 1.0 / jnp.sqrt(jnp.float32(hidden))
    keys = jax.random.split(key, 12)

    def u(kk, shape):
        return jax.random.uniform(kk, shape, jnp.float32, minval=-k, maxval=k)

    # PyTorch stores weight_ih_l{n}: (4H, in), weight_hh_l{n}: (4H, H); we pass transposes.
    w_ih0_T = u(keys[0], (input_dim, 4 * hidden))
    w_hh0_T = u(keys[1], (hidden, 4 * hidden))
    b0 = (u(keys[2], (4 * hidden,)) + u(keys[3], (4 * hidden,))).reshape(1, 4 * hidden)

    w_ih1_T = u(keys[4], (hidden, 4 * hidden))
    w_hh1_T = u(keys[5], (hidden, 4 * hidden))
    b1 = (u(keys[6], (4 * hidden,)) + u(keys[7], (4 * hidden,))).reshape(1, 4 * hidden)

    fc1_w_T = u(keys[8], (hidden, hidden // 2))
    fc1_b = u(keys[9], (hidden // 2,)).reshape(1, hidden // 2)
    fc2_w_T = u(keys[10], (hidden // 2, 1))
    fc2_b = u(keys[11], (1,)).reshape(1, 1)

    return (w_ih0_T, w_hh0_T, b0, w_ih1_T, w_hh1_T, b1,
            fc1_w_T, fc1_b, fc2_w_T, fc2_b)


# ----------------------- pure-JAX reference for verification -----------------------

def reference_forward(x, params):
    (w_ih0_T, w_hh0_T, b0, w_ih1_T, w_hh1_T, b1,
     fc1_w_T, fc1_b, fc2_w_T, fc2_b) = params
    B, T, _ = x.shape
    H = HIDDEN

    def cell(x_t, h, c, w_ih_T, w_hh_T, b):
        g = x_t @ w_ih_T + h @ w_hh_T + b
        i = jax.nn.sigmoid(g[:, 0 * H:1 * H])
        f = jax.nn.sigmoid(g[:, 1 * H:2 * H])
        gg = jnp.tanh(g[:, 2 * H:3 * H])
        o = jax.nn.sigmoid(g[:, 3 * H:4 * H])
        c = f * c + i * gg
        h = o * jnp.tanh(c)
        return h, c

    h0 = c0 = h1 = c1 = jnp.zeros((B, H), jnp.float32)
    for t in range(T):
        h0, c0 = cell(x[:, t, :], h0, c0, w_ih0_T, w_hh0_T, b0)
        h1, c1 = cell(h0, h1, c1, w_ih1_T, w_hh1_T, b1)
    z = jnp.maximum(h1 @ fc1_w_T + fc1_b, 0.0)
    y = z @ fc2_w_T + fc2_b
    return y[:, 0]


if __name__ == "__main__":
    key = jax.random.PRNGKey(0)
    k_x, k_p = jax.random.split(key)
    x = jax.random.normal(k_x, (BATCH, SEQ, INPUT_DIM), dtype=jnp.float32)
    params = init_params(k_p)

    out = lstm_regressor_forward(x, params)
    out = jax.block_until_ready(out)

    ref = reference_forward(x, params)
    assert out.shape == (BATCH,)
    assert jnp.allclose(out, ref, atol=1e-4, rtol=1e-4), (out, ref)
    print("KERNEL_OK")
</pallas_src>

<mosaic_0001>
module attributes {stable_mosaic.version = 11 : i64} {
  func.func @_lstm_regressor_kernel(%arg0: memref<16x2xf32, #tpu.memory_space<vmem>>, %arg1: memref<2x256xf32, #tpu.memory_space<vmem>>, %arg2: memref<1x256xf32, #tpu.memory_space<vmem>>, %arg3: memref<64x512xf32, #tpu.memory_space<vmem>>, %arg4: memref<64x256xf32, #tpu.memory_space<vmem>>, %arg5: memref<1x256xf32, #tpu.memory_space<vmem>>, %arg6: memref<64x32xf32, #tpu.memory_space<vmem>>, %arg7: memref<1x32xf32, #tpu.memory_space<vmem>>, %arg8: memref<32x1xf32, #tpu.memory_space<vmem>>, %arg9: memref<1x1xf32, #tpu.memory_space<vmem>>, %arg10: memref<2x1xf32, #tpu.memory_space<vmem>>) attributes {dimension_semantics = [], scalar_prefetch = 0 : i64, scratch_operands = 0 : i64, tpu.core_type = #tpu.core_type<tc>} {
    %c0 = arith.constant 0 : index
    %c0_0 = arith.constant 0 : index
    %0 = vector.load %arg3[%c0, %c0_0] : memref<64x512xf32, #tpu.memory_space<vmem>>, vector<64x512xf32>
    %c0_1 = arith.constant 0 : index
    %c0_2 = arith.constant 0 : index
    %1 = vector.load %arg4[%c0_1, %c0_2] : memref<64x256xf32, #tpu.memory_space<vmem>>, vector<64x256xf32>
    %c0_3 = arith.constant 0 : index
    %c0_4 = arith.constant 0 : index
    %2 = vector.load %arg5[%c0_3, %c0_4] : memref<1x256xf32, #tpu.memory_space<vmem>>, vector<1x256xf32>
    %3 = vector.shape_cast %2 : vector<1x256xf32> to vector<1x256xf32>
    %4 = vector.broadcast %3 : vector<1x256xf32> to vector<2x256xf32>
    %c0_5 = arith.constant 0 : index
    %c0_6 = arith.constant 0 : index
    %5 = vector.load %arg0[%c0_5, %c0_6] : memref<16x2xf32, #tpu.memory_space<vmem>>, vector<16x2xf32>
    %c0_7 = arith.constant 0 : index
    %c0_8 = arith.constant 0 : index
    %6 = vector.load %arg1[%c0_7, %c0_8] : memref<2x256xf32, #tpu.memory_space<vmem>>, vector<2x256xf32>
    %cst = arith.constant dense<0.000000e+00> : vector<16x256xf32>
    %7 = tpu.matmul %5, %6, %cst {dimension_numbers = #tpu.dot_dimension_numbers<[1], [0], [0], [1], [0, 0, 1, 1], [], []>} : vector<16x2xf32>, vector<2x256xf32>, vector<16x256xf32> -> vector<16x256xf32>
    %c0_9 = arith.constant 0 : index
    %c0_10 = arith.constant 0 : index
    %8 = vector.load %arg2[%c0_9, %c0_10] : memref<1x256xf32, #tpu.memory_space<vmem>>, vector<1x256xf32>
    %9 = vector.broadcast %8 : vector<1x256xf32> to vector<16x256xf32>
    %10 = arith.addf %7, %9 : vector<16x256xf32>
    %cst_11 = arith.constant 0.000000e+00 : f32
    %11 = vector.broadcast %cst_11 : f32 to vector<2x256xf32>
    %cst_12 = arith.constant 0.000000e+00 : f32
    %12 = vector.broadcast %cst_12 : f32 to vector<2x64xf32>
    %13 = vector.extract_strided_slice %10 {offsets = [0, 0], sizes = [2, 256], strides = [1, 1]} : vector<16x256xf32> to vector<2x256xf32>
    %14 = arith.addf %13, %11 : vector<2x256xf32>
    %15 = arith.negf %14 : vector<2x256xf32>
    %16 = math.exp %15 : vector<2x256xf32>
    %cst_13 = arith.constant 1.000000e+00 : f32
    %17 = vector.broadcast %cst_13 : f32 to vector<2x256xf32>
    %18 = arith.addf %17, %16 : vector<2x256xf32>
    %19 = arith.divf %17, %18 : vector<2x256xf32>
    %20 = math.tanh %14 : vector<2x256xf32>
    %21 = vector.extract_strided_slice %19 {offsets = [0, 0], sizes = [2, 64], strides = [1, 1]} : vector<2x256xf32> to vector<2x64xf32>
    %22 = vector.extract_strided_slice %19 {offsets = [0, 64], sizes = [2, 64], strides = [1, 1]} : vector<2x256xf32> to vector<2x64xf32>
    %23 = vector.extract_strided_slice %20 {offsets = [0, 128], sizes = [2, 64], strides = [1, 1]} : vector<2x256xf32> to vector<2x64xf32>
    %24 = vector.extract_strided_slice %19 {offsets = [0, 192], sizes = [2, 64], strides = [1, 1]} : vector<2x256xf32> to vector<2x64xf32>
    %25 = arith.mulf %22, %12 : vector<2x64xf32>
    %26 = arith.mulf %21, %23 : vector<2x64xf32>
    %27 = arith.addf %25, %26 : vector<2x64xf32>
    %28 = math.tanh %27 : vector<2x64xf32>
    %29 = arith.mulf %24, %28 : vector<2x64xf32>
    %cst_14 = arith.constant dense<0.000000e+00> : vector<2x512xf32>
    %30 = tpu.matmul %29, %0, %cst_14 {dimension_numbers = #tpu.dot_dimension_numbers<[1], [0], [0], [1], [0, 0, 1, 1], [], []>} : vector<2x64xf32>, vector<64x512xf32>, vector<2x512xf32> -> vector<2x512xf32>
    %31 = vector.extract_strided_slice %30 {offsets = [0, 0], sizes = [2, 256], strides = [1, 1]} : vector<2x512xf32> to vector<2x256xf32>
    %32 = vector.extract_strided_slice %30 {offsets = [0, 256], sizes = [2, 256], strides = [1, 1]} : vector<2x512xf32> to vector<2x256xf32>
    %33 = arith.addf %32, %11 : vector<2x256xf32>
    %34 = arith.addf %33, %4 : vector<2x256xf32>
    %35 = arith.negf %34 : vector<2x256xf32>
    %36 = math.exp %35 : vector<2x256xf32>
    %cst_15 = arith.constant 1.000000e+00 : f32
    %37 = vector.broadcast %cst_15 : f32 to vector<2x256xf32>
    %38 = arith.addf %37, %36 : vector<2x256xf32>
    %39 = arith.divf %37, %38 : vector<2x256xf32>
    %40 = math.tanh %34 : vector<2x256xf32>
    %41 = vector.extract_strided_slice %39 {offsets = [0, 0], sizes = [2, 64], strides = [1, 1]} : vector<2x256xf32> to vector<2x64xf32>
    %42 = vector.extract_strided_slice %39 {offsets = [0, 64], sizes = [2, 64], strides = [1, 1]} : vector<2x256xf32> to vector<2x64xf32>
    %43 = vector.extract_strided_slice %40 {offsets = [0, 128], sizes = [2, 64], strides = [1, 1]} : vector<2x256xf32> to vector<2x64xf32>
    %44 = vector.extract_strided_slice %39 {offsets = [0, 192], sizes = [2, 64], strides = [1, 1]} : vector<2x256xf32> to vector<2x64xf32>
    %45 = arith.mulf %42, %12 : vector<2x64xf32>
    %46 = arith.mulf %41, %43 : vector<2x64xf32>
    %47 = arith.addf %45, %46 : vector<2x64xf32>
    %48 = math.tanh %47 : vector<2x64xf32>
    %49 = arith.mulf %44, %48 : vector<2x64xf32>
    %cst_16 = arith.constant dense<0.000000e+00> : vector<2x256xf32>
    %50 = tpu.matmul %49, %1, %cst_16 {dimension_numbers = #tpu.dot_dimension_numbers<[1], [0], [0], [1], [0, 0, 1, 1], [], []>} : vector<2x64xf32>, vector<64x256xf32>, vector<2x256xf32> -> vector<2x256xf32>
    %51 = vector.extract_strided_slice %10 {offsets = [2, 0], sizes = [2, 256], strides = [1, 1]} : vector<16x256xf32> to vector<2x256xf32>
    %52 = arith.addf %51, %31 : vector<2x256xf32>
    %53 = arith.negf %52 : vector<2x256xf32>
    %54 = math.exp %53 : vector<2x256xf32>
    %cst_17 = arith.constant 1.000000e+00 : f32
    %55 = vector.broadcast %cst_17 : f32 to vector<2x256xf32>
    %56 = arith.addf %55, %54 : vector<2x256xf32>
    %57 = arith.divf %55, %56 : vector<2x256xf32>
    %58 = math.tanh %52 : vector<2x256xf32>
    %59 = vector.extract_strided_slice %57 {offsets = [0, 0], sizes = [2, 64], strides = [1, 1]} : vector<2x256xf32> to vector<2x64xf32>
    %60 = vector.extract_strided_slice %57 {offsets = [0, 64], sizes = [2, 64], strides = [1, 1]} : vector<2x256xf32> to vector<2x64xf32>
    %61 = vector.extract_strided_slice %58 {offsets = [0, 128], sizes = [2, 64], strides = [1, 1]} : vector<2x256xf32> to vector<2x64xf32>
    %62 = vector.extract_strided_slice %57 {offsets = [0, 192], sizes = [2, 64], strides = [1, 1]} : vector<2x256xf32> to vector<2x64xf32>
    %63 = arith.mulf %60, %27 : vector<2x64xf32>
    %64 = arith.mulf %59, %61 : vector<2x64xf32>
    %65 = arith.addf %63, %64 : vector<2x64xf32>
    %66 = math.tanh %65 : vector<2x64xf32>
    %67 = arith.mulf %62, %66 : vector<2x64xf32>
    %cst_18 = arith.constant dense<0.000000e+00> : vector<2x512xf32>
    %68 = tpu.matmul %67, %0, %cst_18 {dimension_numbers = #tpu.dot_dimension_numbers<[1], [0], [0], [1], [0, 0, 1, 1], [], []>} : vector<2x64xf32>, vector<64x512xf32>, vector<2x512xf32> -> vector<2x512xf32>
    %69 = vector.extract_strided_slice %68 {offsets = [0, 0], sizes = [2, 256], strides = [1, 1]} : vector<2x512xf32> to vector<2x256xf32>
    %70 = vector.extract_strided_slice %68 {offsets = [0, 256], sizes = [2, 256], strides = [1, 1]} : vector<2x512xf32> to vector<2x256xf32>
    %71 = arith.addf %70, %50 : vector<2x256xf32>
    %72 = arith.addf %71, %4 : vector<2x256xf32>
    %73 = arith.negf %72 : vector<2x256xf32>
    %74 = math.exp %73 : vector<2x256xf32>
    %cst_19 = arith.constant 1.000000e+00 : f32
    %75 = vector.broadcast %cst_19 : f32 to vector<2x256xf32>
    %76 = arith.addf %75, %74 : vector<2x256xf32>
    %77 = arith.divf %75, %76 : vector<2x256xf32>
    %78 = math.tanh %72 : vector<2x256xf32>
    %79 = vector.extract_strided_slice %77 {offsets = [0, 0], sizes = [2, 64], strides = [1, 1]} : vector<2x256xf32> to vector<2x64xf32>
    %80 = vector.extract_strided_slice %77 {offsets = [0, 64], sizes = [2, 64], strides = [1, 1]} : vector<2x256xf32> to vector<2x64xf32>
    %81 = vector.extract_strided_slice %78 {offsets = [0, 128], sizes = [2, 64], strides = [1, 1]} : vector<2x256xf32> to vector<2x64xf32>
    %82 = vector.extract_strided_slice %77 {offsets = [0, 192], sizes = [2, 64], strides = [1, 1]} : vector<2x256xf32> to vector<2x64xf32>
    %83 = arith.mulf %80, %47 : vector<2x64xf32>
    %84 = arith.mulf %79, %81 : vector<2x64xf32>
    %85 = arith.addf %83, %84 : vector<2x64xf32>
    %86 = math.tanh %85 : vector<2x64xf32>
    %87 = arith.mulf %82, %86 : vector<2x64xf32>
    %cst_20 = arith.constant dense<0.000000e+00> : vector<2x256xf32>
    %88 = tpu.matmul %87, %1, %cst_20 {dimension_numbers = #tpu.dot_dimension_numbers<[1], [0], [0], [1], [0, 0, 1, 1], [], []>} : vector<2x64xf32>, vector<64x256xf32>, vector<2x256xf32> -> vector<2x256xf32>
    %89 = vector.extract_strided_slice %10 {offsets = [4, 0], sizes = [2, 256], strides = [1, 1]} : vector<16x256xf32> to vector<2x256xf32>
    %90 = arith.addf %89, %69 : vector<2x256xf32>
    %91 = arith.negf %90 : vector<2x256xf32>
    %92 = math.exp %91 : vector<2x256xf32>
    %cst_21 = arith.constant 1.000000e+00 : f32
    %93 = vector.broadcast %cst_21 : f32 to vector<2x256xf32>
    %94 = arith.addf %93, %92 : vector<2x256xf32>
    %95 = arith.divf %93, %94 : vector<2x256xf32>
    %96 = math.tanh %90 : vector<2x256xf32>
    %97 = vector.extract_strided_slice %95 {offsets = [0, 0], sizes = [2, 64], strides = [1, 1]} : vector<2x256xf32> to vector<2x64xf32>
    %98 = vector.extract_strided_slice %95 {offsets = [0, 64], sizes = [2, 64], strides = [1, 1]} : vector<2x256xf32> to vector<2x64xf32>
    %99 = vector.extract_strided_slice %96 {offsets = [0, 128], sizes = [2, 64], strides = [1, 1]} : vector<2x256xf32> to vector<2x64xf32>
    %100 = vector.extract_strided_slice %95 {offsets = [0, 192], sizes = [2, 64], strides = [1, 1]} : vector<2x256xf32> to vector<2x64xf32>
    %101 = arith.mulf %98, %65 : vector<2x64xf32>
    %102 = arith.mulf %97, %99 : vector<2x64xf32>
    %103 = arith.addf %101, %102 : vector<2x64xf32>
    %104 = math.tanh %103 : vector<2x64xf32>
    %105 = arith.mulf %100, %104 : vector<2x64xf32>
    %cst_22 = arith.constant dense<0.000000e+00> : vector<2x512xf32>
    %106 = tpu.matmul %105, %0, %cst_22 {dimension_numbers = #tpu.dot_dimension_numbers<[1], [0], [0], [1], [0, 0, 1, 1], [], []>} : vector<2x64xf32>, vector<64x512xf32>, vector<2x512xf32> -> vector<2x512xf32>
    %107 = vector.extract_strided_slice %106 {offsets = [0, 0], sizes = [2, 256], strides = [1, 1]} : vector<2x512xf32> to vector<2x256xf32>
    %108 = vector.extract_strided_slice %106 {offsets = [0, 256], sizes = [2, 256], strides = [1, 1]} : vector<2x512xf32> to vector<2x256xf32>
    %109 = arith.addf %108, %88 : vector<2x256xf32>
    %110 = arith.addf %109, %4 : vector<2x256xf32>
    %111 = arith.negf %110 : vector<2x256xf32>
    %112 = math.exp %111 : vector<2x256xf32>
    %cst_23 = arith.constant 1.000000e+00 : f32
    %113 = vector.broadcast %cst_23 : f32 to vector<2x256xf32>
    %114 = arith.addf %113, %112 : vector<2x256xf32>
    %115 = arith.divf %113, %114 : vector<2x256xf32>
    %116 = math.tanh %110 : vector<2x256xf32>
    %117 = vector.extract_strided_slice %115 {offsets = [0, 0], sizes = [2, 64], strides = [1, 1]} : vector<2x256xf32> to vector<2x64xf32>
    %118 = vector.extract_strided_slice %115 {offsets = [0, 64], sizes = [2, 64], strides = [1, 1]} : vector<2x256xf32> to vector<2x64xf32>
    %119 = vector.extract_strided_slice %116 {offsets = [0, 128], sizes = [2, 64], strides = [1, 1]} : vector<2x256xf32> to vector<2x64xf32>
    %120 = vector.extract_strided_slice %115 {offsets = [0, 192], sizes = [2, 64], strides = [1, 1]} : vector<2x256xf32> to vector<2x64xf32>
    %121 = arith.mulf %118, %85 : vector<2x64xf32>
    %122 = arith.mulf %117, %119 : vector<2x64xf32>
    %123 = arith.addf %121, %122 : vector<2x64xf32>
    %124 = math.tanh %123 : vector<2x64xf32>
    %125 = arith.mulf %120, %124 : vector<2x64xf32>
    %cst_24 = arith.constant dense<0.000000e+00> : vector<2x256xf32>
    %126 = tpu.matmul %125, %1, %cst_24 {dimension_numbers = #tpu.dot_dimension_numbers<[1], [0], [0], [1], [0, 0, 1, 1], [], []>} : vector<2x64xf32>, vector<64x256xf32>, vector<2x256xf32> -> vector<2x256xf32>
    %127 = vector.extract_strided_slice %10 {offsets = [6, 0], sizes = [2, 256], strides = [1, 1]} : vector<16x256xf32> to vector<2x256xf32>
    %128 = arith.addf %127, %107 : vector<2x256xf32>
    %129 = arith.negf %128 : vector<2x256xf32>
    %130 = math.exp %129 : vector<2x256xf32>
    %cst_25 = arith.constant 1.000000e+00 : f32
    %131 = vector.broadcast %cst_25 : f32 to vector<2x256xf32>
    %132 = arith.addf %131, %130 : vector<2x256xf32>
    %133 = arith.divf %131, %132 : vector<2x256xf32>
    %134 = math.tanh %128 : vector<2x256xf32>
    %135 = vector.extract_strided_slice %133 {offsets = [0, 0], sizes = [2, 64], strides = [1, 1]} : vector<2x256xf32> to vector<2x64xf32>
    %136 = vector.extract_strided_slice %133 {offsets = [0, 64], sizes = [2, 64], strides = [1, 1]} : vector<2x256xf32> to vector<2x64xf32>
    %137 = vector.extract_strided_slice %134 {offsets = [0, 128], sizes = [2, 64], strides = [1, 1]} : vector<2x256xf32> to vector<2x64xf32>
    %138 = vector.extract_strided_slice %133 {offsets = [0, 192], sizes = [2, 64], strides = [1, 1]} : vector<2x256xf32> to vector<2x64xf32>
    %139 = arith.mulf %136, %103 : vector<2x64xf32>
    %140 = arith.mulf %135, %137 : vector<2x64xf32>
    %141 = arith.addf %139, %140 : vector<2x64xf32>
    %142 = math.tanh %141 : vector<2x64xf32>
    %143 = arith.mulf %138, %142 : vector<2x64xf32>
    %cst_26 = arith.constant dense<0.000000e+00> : vector<2x512xf32>
    %144 = tpu.matmul %143, %0, %cst_26 {dimension_numbers = #tpu.dot_dimension_numbers<[1], [0], [0], [1], [0, 0, 1, 1], [], []>} : vector<2x64xf32>, vector<64x512xf32>, vector<2x512xf32> -> vector<2x512xf32>
    %145 = vector.extract_strided_slice %144 {offsets = [0, 0], sizes = [2, 256], strides = [1, 1]} : vector<2x512xf32> to vector<2x256xf32>
    %146 = vector.extract_strided_slice %144 {offsets = [0, 256], sizes = [2, 256], strides = [1, 1]} : vector<2x512xf32> to vector<2x256xf32>
    %147 = arith.addf %146, %126 : vector<2x256xf32>
    %148 = arith.addf %147, %4 : vector<2x256xf32>
    %149 = arith.negf %148 : vector<2x256xf32>
    %150 = math.exp %149 : vector<2x256xf32>
    %cst_27 = arith.constant 1.000000e+00 : f32
    %151 = vector.broadcast %cst_27 : f32 to vector<2x256xf32>
    %152 = arith.addf %151, %150 : vector<2x256xf32>
    %153 = arith.divf %151, %152 : vector<2x256xf32>
    %154 = math.tanh %148 : vector<2x256xf32>
    %155 = vector.extract_strided_slice %153 {offsets = [0, 0], sizes = [2, 64], strides = [1, 1]} : vector<2x256xf32> to vector<2x64xf32>
    %156 = vector.extract_strided_slice %153 {offsets = [0, 64], sizes = [2, 64], strides = [1, 1]} : vector<2x256xf32> to vector<2x64xf32>
    %157 = vector.extract_strided_slice %154 {offsets = [0, 128], sizes = [2, 64], strides = [1, 1]} : vector<2x256xf32> to vector<2x64xf32>
    %158 = vector.extract_strided_slice %153 {offsets = [0, 192], sizes = [2, 64], strides = [1, 1]} : vector<2x256xf32> to vector<2x64xf32>
    %159 = arith.mulf %156, %123 : vector<2x64xf32>
    %160 = arith.mulf %155, %157 : vector<2x64xf32>
    %161 = arith.addf %159, %160 : vector<2x64xf32>
    %162 = math.tanh %161 : vector<2x64xf32>
    %163 = arith.mulf %158, %162 : vector<2x64xf32>
    %cst_28 = arith.constant dense<0.000000e+00> : vector<2x256xf32>
    %164 = tpu.matmul %163, %1, %cst_28 {dimension_numbers = #tpu.dot_dimension_numbers<[1], [0], [0], [1], [0, 0, 1, 1], [], []>} : vector<2x64xf32>, vector<64x256xf32>, vector<2x256xf32> -> vector<2x256xf32>
    %165 = vector.extract_strided_slice %10 {offsets = [8, 0], sizes = [2, 256], strides = [1, 1]} : vector<16x256xf32> to vector<2x256xf32>
    %166 = arith.addf %165, %145 : vector<2x256xf32>
    %167 = arith.negf %166 : vector<2x256xf32>
    %168 = math.exp %167 : vector<2x256xf32>
    %cst_29 = arith.constant 1.000000e+00 : f32
    %169 = vector.broadcast %cst_29 : f32 to vector<2x256xf32>
    %170 = arith.addf %169, %168 : vector<2x256xf32>
    %171 = arith.divf %169, %170 : vector<2x256xf32>
    %172 = math.tanh %166 : vector<2x256xf32>
    %173 = vector.extract_strided_slice %171 {offsets = [0, 0], sizes = [2, 64], strides = [1, 1]} : vector<2x256xf32> to vector<2x64xf32>
    %174 = vector.extract_strided_slice %171 {offsets = [0, 64], sizes = [2, 64], strides = [1, 1]} : vector<2x256xf32> to vector<2x64xf32>
    %175 = vector.extract_strided_slice %172 {offsets = [0, 128], sizes = [2, 64], strides = [1, 1]} : vector<2x256xf32> to vector<2x64xf32>
    %176 = vector.extract_strided_slice %171 {offsets = [0, 192], sizes = [2, 64], strides = [1, 1]} : vector<2x256xf32> to vector<2x64xf32>
    %177 = arith.mulf %174, %141 : vector<2x64xf32>
    %178 = arith.mulf %173, %175 : vector<2x64xf32>
    %179 = arith.addf %177, %178 : vector<2x64xf32>
    %180 = math.tanh %179 : vector<2x64xf32>
    %181 = arith.mulf %176, %180 : vector<2x64xf32>
    %cst_30 = arith.constant dense<0.000000e+00> : vector<2x512xf32>
    %182 = tpu.matmul %181, %0, %cst_30 {dimension_numbers = #tpu.dot_dimension_numbers<[1], [0], [0], [1], [0, 0, 1, 1], [], []>} : vector<2x64xf32>, vector<64x512xf32>, vector<2x512xf32> -> vector<2x512xf32>
    %183 = vector.extract_strided_slice %182 {offsets = [0, 0], sizes = [2, 256], strides = [1, 1]} : vector<2x512xf32> to vector<2x256xf32>
    %184 = vector.extract_strided_slice %182 {offsets = [0, 256], sizes = [2, 256], strides = [1, 1]} : vector<2x512xf32> to vector<2x256xf32>
    %185 = arith.addf %184, %164 : vector<2x256xf32>
    %186 = arith.addf %185, %4 : vector<2x256xf32>
    %187 = arith.negf %186 : vector<2x256xf32>
    %188 = math.exp %187 : vector<2x256xf32>
    %cst_31 = arith.constant 1.000000e+00 : f32
    %189 = vector.broadcast %cst_31 : f32 to vector<2x256xf32>
    %190 = arith.addf %189, %188 : vector<2x256xf32>
    %191 = arith.divf %189, %190 : vector<2x256xf32>
    %192 = math.tanh %186 : vector<2x256xf32>
    %193 = vector.extract_strided_slice %191 {offsets = [0, 0], sizes = [2, 64], strides = [1, 1]} : vector<2x256xf32> to vector<2x64xf32>
    %194 = vector.extract_strided_slice %191 {offsets = [0, 64], sizes = [2, 64], strides = [1, 1]} : vector<2x256xf32> to vector<2x64xf32>
    %195 = vector.extract_strided_slice %192 {offsets = [0, 128], sizes = [2, 64], strides = [1, 1]} : vector<2x256xf32> to vector<2x64xf32>
    %196 = vector.extract_strided_slice %191 {offsets = [0, 192], sizes = [2, 64], strides = [1, 1]} : vector<2x256xf32> to vector<2x64xf32>
    %197 = arith.mulf %194, %161 : vector<2x64xf32>
    %198 = arith.mulf %193, %195 : vector<2x64xf32>
    %199 = arith.addf %197, %198 : vector<2x64xf32>
    %200 = math.tanh %199 : vector<2x64xf32>
    %201 = arith.mulf %196, %200 : vector<2x64xf32>
    %cst_32 = arith.constant dense<0.000000e+00> : vector<2x256xf32>
    %202 = tpu.matmul %201, %1, %cst_32 {dimension_numbers = #tpu.dot_dimension_numbers<[1], [0], [0], [1], [0, 0, 1, 1], [], []>} : vector<2x64xf32>, vector<64x256xf32>, vector<2x256xf32> -> vector<2x256xf32>
    %203 = vector.extract_strided_slice %10 {offsets = [10, 0], sizes = [2, 256], strides = [1, 1]} : vector<16x256xf32> to vector<2x256xf32>
    %204 = arith.addf %203, %183 : vector<2x256xf32>
    %205 = arith.negf %204 : vector<2x256xf32>
    %206 = math.exp %205 : vector<2x256xf32>
    %cst_33 = arith.constant 1.000000e+00 : f32
    %207 = vector.broadcast %cst_33 : f32 to vector<2x256xf32>
    %208 = arith.addf %207, %206 : vector<2x256xf32>
    %209 = arith.divf %207, %208 : vector<2x256xf32>
    %210 = math.tanh %204 : vector<2x256xf32>
    %211 = vector.extract_strided_slice %209 {offsets = [0, 0], sizes = [2, 64], strides = [1, 1]} : vector<2x256xf32> to vector<2x64xf32>
    %212 = vector.extract_strided_slice %209 {offsets = [0, 64], sizes = [2, 64], strides = [1, 1]} : vector<2x256xf32> to vector<2x64xf32>
    %213 = vector.extract_strided_slice %210 {offsets = [0, 128], sizes = [2, 64], strides = [1, 1]} : vector<2x256xf32> to vector<2x64xf32>
    %214 = vector.extract_strided_slice %209 {offsets = [0, 192], sizes = [2, 64], strides = [1, 1]} : vector<2x256xf32> to vector<2x64xf32>
    %215 = arith.mulf %212, %179 : vector<2x64xf32>
    %216 = arith.mulf %211, %213 : vector<2x64xf32>
    %217 = arith.addf %215, %216 : vector<2x64xf32>
    %218 = math.tanh %217 : vector<2x64xf32>
    %219 = arith.mulf %214, %218 : vector<2x64xf32>
    %cst_34 = arith.constant dense<0.000000e+00> : vector<2x512xf32>
    %220 = tpu.matmul %219, %0, %cst_34 {dimension_numbers = #tpu.dot_dimension_numbers<[1], [0], [0], [1], [0, 0, 1, 1], [], []>} : vector<2x64xf32>, vector<64x512xf32>, vector<2x512xf32> -> vector<2x512xf32>
    %221 = vector.extract_strided_slice %220 {offsets = [0, 0], sizes = [2, 256], strides = [1, 1]} : vector<2x512xf32> to vector<2x256xf32>
    %222 = vector.extract_strided_slice %220 {offsets = [0, 256], sizes = [2, 256], strides = [1, 1]} : vector<2x512xf32> to vector<2x256xf32>
    %223 = arith.addf %222, %202 : vector<2x256xf32>
    %224 = arith.addf %223, %4 : vector<2x256xf32>
    %225 = arith.negf %224 : vector<2x256xf32>
    %226 = math.exp %225 : vector<2x256xf32>
    %cst_35 = arith.constant 1.000000e+00 : f32
    %227 = vector.broadcast %cst_35 : f32 to vector<2x256xf32>
    %228 = arith.addf %227, %226 : vector<2x256xf32>
    %229 = arith.divf %227, %228 : vector<2x256xf32>
    %230 = math.tanh %224 : vector<2x256xf32>
    %231 = vector.extract_strided_slice %229 {offsets = [0, 0], sizes = [2, 64], strides = [1, 1]} : vector<2x256xf32> to vector<2x64xf32>
    %232 = vector.extract_strided_slice %229 {offsets = [0, 64], sizes = [2, 64], strides = [1, 1]} : vector<2x256xf32> to vector<2x64xf32>
    %233 = vector.extract_strided_slice %230 {offsets = [0, 128], sizes = [2, 64], strides = [1, 1]} : vector<2x256xf32> to vector<2x64xf32>
    %234 = vector.extract_strided_slice %229 {offsets = [0, 192], sizes = [2, 64], strides = [1, 1]} : vector<2x256xf32> to vector<2x64xf32>
    %235 = arith.mulf %232, %199 : vector<2x64xf32>
    %236 = arith.mulf %231, %233 : vector<2x64xf32>
    %237 = arith.addf %235, %236 : vector<2x64xf32>
    %238 = math.tanh %237 : vector<2x64xf32>
    %239 = arith.mulf %234, %238 : vector<2x64xf32>
    %cst_36 = arith.constant dense<0.000000e+00> : vector<2x256xf32>
    %240 = tpu.matmul %239, %1, %cst_36 {dimension_numbers = #tpu.dot_dimension_numbers<[1], [0], [0], [1], [0, 0, 1, 1], [], []>} : vector<2x64xf32>, vector<64x256xf32>, vector<2x256xf32> -> vector<2x256xf32>
    %241 = vector.extract_strided_slice %10 {offsets = [12, 0], sizes = [2, 256], strides = [1, 1]} : vector<16x256xf32> to vector<2x256xf32>
    %242 = arith.addf %241, %221 : vector<2x256xf32>
    %243 = arith.negf %242 : vector<2x256xf32>
    %244 = math.exp %243 : vector<2x256xf32>
    %cst_37 = arith.constant 1.000000e+00 : f32
    %245 = vector.broadcast %cst_37 : f32 to vector<2x256xf32>
    %246 = arith.addf %245, %244 : vector<2x256xf32>
    %247 = arith.divf %245, %246 : vector<2x256xf32>
    %248 = math.tanh %242 : vector<2x256xf32>
    %249 = vector.extract_strided_slice %247 {offsets = [0, 0], sizes = [2, 64], strides = [1, 1]} : vector<2x256xf32> to vector<2x64xf32>
    %250 = vector.extract_strided_slice %247 {offsets = [0, 64], sizes = [2, 64], strides = [1, 1]} : vector<2x256xf32> to vector<2x64xf32>
    %251 = vector.extract_strided_slice %248 {offsets = [0, 128], sizes = [2, 64], strides = [1, 1]} : vector<2x256xf32> to vector<2x64xf32>
    %252 = vector.extract_strided_slice %247 {offsets = [0, 192], sizes = [2, 64], strides = [1, 1]} : vector<2x256xf32> to vector<2x64xf32>
    %253 = arith.mulf %250, %217 : vector<2x64xf32>
    %254 = arith.mulf %249, %251 : vector<2x64xf32>
    %255 = arith.addf %253, %254 : vector<2x64xf32>
    %256 = math.tanh %255 : vector<2x64xf32>
    %257 = arith.mulf %252, %256 : vector<2x64xf32>
    %cst_38 = arith.constant dense<0.000000e+00> : vector<2x512xf32>
    %258 = tpu.matmul %257, %0, %cst_38 {dimension_numbers = #tpu.dot_dimension_numbers<[1], [0], [0], [1], [0, 0, 1, 1], [], []>} : vector<2x64xf32>, vector<64x512xf32>, vector<2x512xf32> -> vector<2x512xf32>
    %259 = vector.extract_strided_slice %258 {offsets = [0, 0], sizes = [2, 256], strides = [1, 1]} : vector<2x512xf32> to vector<2x256xf32>
    %260 = vector.extract_strided_slice %258 {offsets = [0, 256], sizes = [2, 256], strides = [1, 1]} : vector<2x512xf32> to vector<2x256xf32>
    %261 = arith.addf %260, %240 : vector<2x256xf32>
    %262 = arith.addf %261, %4 : vector<2x256xf32>
    %263 = arith.negf %262 : vector<2x256xf32>
    %264 = math.exp %263 : vector<2x256xf32>
    %cst_39 = arith.constant 1.000000e+00 : f32
    %265 = vector.broadcast %cst_39 : f32 to vector<2x256xf32>
    %266 = arith.addf %265, %264 : vector<2x256xf32>
    %267 = arith.divf %265, %266 : vector<2x256xf32>
    %268 = math.tanh %262 : vector<2x256xf32>
    %269 = vector.extract_strided_slice %267 {offsets = [0, 0], sizes = [2, 64], strides = [1, 1]} : vector<2x256xf32> to vector<2x64xf32>
    %270 = vector.extract_strided_slice %267 {offsets = [0, 64], sizes = [2, 64], strides = [1, 1]} : vector<2x256xf32> to vector<2x64xf32>
    %271 = vector.extract_strided_slice %268 {offsets = [0, 128], sizes = [2, 64], strides = [1, 1]} : vector<2x256xf32> to vector<2x64xf32>
    %272 = vector.extract_strided_slice %267 {offsets = [0, 192], sizes = [2, 64], strides = [1, 1]} : vector<2x256xf32> to vector<2x64xf32>
    %273 = arith.mulf %270, %237 : vector<2x64xf32>
    %274 = arith.mulf %269, %271 : vector<2x64xf32>
    %275 = arith.addf %273, %274 : vector<2x64xf32>
    %276 = math.tanh %275 : vector<2x64xf32>
    %277 = arith.mulf %272, %276 : vector<2x64xf32>
    %cst_40 = arith.constant dense<0.000000e+00> : vector<2x256xf32>
    %278 = tpu.matmul %277, %1, %cst_40 {dimension_numbers = #tpu.dot_dimension_numbers<[1], [0], [0], [1], [0, 0, 1, 1], [], []>} : vector<2x64xf32>, vector<64x256xf32>, vector<2x256xf32> -> vector<2x256xf32>
    %279 = vector.extract_strided_slice %10 {offsets = [14, 0], sizes = [2, 256], strides = [1, 1]} : vector<16x256xf32> to vector<2x256xf32>
    %280 = arith.addf %279, %259 : vector<2x256xf32>
    %281 = arith.negf %280 : vector<2x256xf32>
    %282 = math.exp %281 : vector<2x256xf32>
    %cst_41 = arith.constant 1.000000e+00 : f32
    %283 = vector.broadcast %cst_41 : f32 to vector<2x256xf32>
    %284 = arith.addf %283, %282 : vector<2x256xf32>
    %285 = arith.divf %283, %284 : vector<2x256xf32>
    %286 = math.tanh %280 : vector<2x256xf32>
    %287 = vector.extract_strided_slice %285 {offsets = [0, 0], sizes = [2, 64], strides = [1, 1]} : vector<2x256xf32> to vector<2x64xf32>
    %288 = vector.extract_strided_slice %285 {offsets = [0, 64], sizes = [2, 64], strides = [1, 1]} : vector<2x256xf32> to vector<2x64xf32>
    %289 = vector.extract_strided_slice %286 {offsets = [0, 128], sizes = [2, 64], strides = [1, 1]} : vector<2x256xf32> to vector<2x64xf32>
    %290 = vector.extract_strided_slice %285 {offsets = [0, 192], sizes = [2, 64], strides = [1, 1]} : vector<2x256xf32> to vector<2x64xf32>
    %291 = arith.mulf %288, %255 : vector<2x64xf32>
    %292 = arith.mulf %287, %289 : vector<2x64xf32>
    %293 = arith.addf %291, %292 : vector<2x64xf32>
    %294 = math.tanh %293 : vector<2x64xf32>
    %295 = arith.mulf %290, %294 : vector<2x64xf32>
    %cst_42 = arith.constant dense<0.000000e+00> : vector<2x512xf32>
    %296 = tpu.matmul %295, %0, %cst_42 {dimension_numbers = #tpu.dot_dimension_numbers<[1], [0], [0], [1], [0, 0, 1, 1], [], []>} : vector<2x64xf32>, vector<64x512xf32>, vector<2x512xf32> -> vector<2x512xf32>
    %297 = vector.extract_strided_slice %296 {offsets = [0, 256], sizes = [2, 256], strides = [1, 1]} : vector<2x512xf32> to vector<2x256xf32>
    %298 = arith.addf %297, %278 : vector<2x256xf32>
    %299 = arith.addf %298, %4 : vector<2x256xf32>
    %300 = arith.negf %299 : vector<2x256xf32>
    %301 = math.exp %300 : vector<2x256xf32>
    %cst_43 = arith.constant 1.000000e+00 : f32
    %302 = vector.broadcast %cst_43 : f32 to vector<2x256xf32>
    %303 = arith.addf %302, %301 : vector<2x256xf32>
    %304 = arith.divf %302, %303 : vector<2x256xf32>
    %305 = math.tanh %299 : vector<2x256xf32>
    %306 = vector.extract_strided_slice %304 {offsets = [0, 0], sizes = [2, 64], strides = [1, 1]} : vector<2x256xf32> to vector<2x64xf32>
    %307 = vector.extract_strided_slice %304 {offsets = [0, 64], sizes = [2, 64], strides = [1, 1]} : vector<2x256xf32> to vector<2x64xf32>
    %308 = vector.extract_strided_slice %305 {offsets = [0, 128], sizes = [2, 64], strides = [1, 1]} : vector<2x256xf32> to vector<2x64xf32>
    %309 = vector.extract_strided_slice %304 {offsets = [0, 192], sizes = [2, 64], strides = [1, 1]} : vector<2x256xf32> to vector<2x64xf32>
    %310 = arith.mulf %307, %275 : vector<2x64xf32>
    %311 = arith.mulf %306, %308 : vector<2x64xf32>
    %312 = arith.addf %310, %311 : vector<2x64xf32>
    %313 = math.tanh %312 : vector<2x64xf32>
    %314 = arith.mulf %309, %313 : vector<2x64xf32>
    %c0_44 = arith.constant 0 : index
    %c0_45 = arith.constant 0 : index
    %315 = vector.load %arg6[%c0_44, %c0_45] : memref<64x32xf32, #tpu.memory_space<vmem>>, vector<64x32xf32>
    %cst_46 = arith.constant dense<0.000000e+00> : vector<2x32xf32>
    %316 = tpu.matmul %314, %315, %cst_46 {dimension_numbers = #tpu.dot_dimension_numbers<[1], [0], [0], [1], [0, 0, 1, 1], [], []>} : vector<2x64xf32>, vector<64x32xf32>, vector<2x32xf32> -> vector<2x32xf32>
    %c0_47 = arith.constant 0 : index
    %c0_48 = arith.constant 0 : index
    %317 = vector.load %arg7[%c0_47, %c0_48] : memref<1x32xf32, #tpu.memory_space<vmem>>, vector<1x32xf32>
    %318 = vector.broadcast %317 : vector<1x32xf32> to vector<2x32xf32>
    %319 = arith.addf %316, %318 : vector<2x32xf32>
    %cst_49 = arith.constant 0.000000e+00 : f32
    %320 = vector.broadcast %cst_49 : f32 to vector<2x32xf32>
    %321 = arith.maximumf %319, %320 : vector<2x32xf32>
    %c0_50 = arith.constant 0 : index
    %c0_51 = arith.constant 0 : index
    %322 = vector.load %arg8[%c0_50, %c0_51] : memref<32x1xf32, #tpu.memory_space<vmem>>, vector<32x1xf32>
    %cst_52 = arith.constant dense<0.000000e+00> : vector<2x1xf32>
    %323 = tpu.matmul %321, %322, %cst_52 {dimension_numbers = #tpu.dot_dimension_numbers<[1], [0], [0], [1], [0, 0, 1, 1], [], []>} : vector<2x32xf32>, vector<32x1xf32>, vector<2x1xf32> -> vector<2x1xf32>
    %c0_53 = arith.constant 0 : index
    %c0_54 = arith.constant 0 : index
    %324 = vector.load %arg9[%c0_53, %c0_54] : memref<1x1xf32, #tpu.memory_space<vmem>>, vector<1x1xf32>
    %325 = vector.broadcast %324 : vector<1x1xf32> to vector<2x1xf32>
    %326 = arith.addf %323, %325 : vector<2x1xf32>
    %c0_55 = arith.constant 0 : index
    %c0_56 = arith.constant 0 : index
    %327 = vector.load %arg10[%c0_55, %c0_56] : memref<2x1xf32, #tpu.memory_space<vmem>>, vector<2x1xf32>
    tpu.vector_store %arg10[%c0_55, %c0_56], %326 {strides = array<i32>} : memref<2x1xf32, #tpu.memory_space<vmem>>, vector<2x1xf32>,
    return
  }
}

</mosaic_0001>

<bundles_post_ra>
// kernel: tpu_custom_call.1
= control target key start
LH: loop header
LB: loop body
LE: loop exit
PB: predicated region body
PF: predicated region fallthrough
CT: control target
= control target key end

     0   :  { %s3866_s0 = inlined_call_operand.vmem [shape: f32[16,2], index: 0, kind: input, shape index: {}]   ;;  %s3867_s1 = inlined_call_operand.vmem [shape: f32[2,256], index: 1, kind: input, shape index: {}]   ;;  %s3868_s2 = inlined_call_operand.vmem [shape: f32[1,256], index: 2, kind: input, shape index: {}]   ;;  %s3869_s3 = inlined_call_operand.hbm [shape: f32[64,512], index: 3, kind: input, shape index: {}]   ;;  %s3870_s4 = inlined_call_operand.vmem [shape: f32[64,256], index: 4, kind: input, shape index: {}]   ;;  %s3871_s5 = inlined_call_operand.vmem [shape: f32[1,256], index: 5, kind: input, shape index: {}]   ;;  %s3872_s6 = inlined_call_operand.vmem [shape: f32[64,32], index: 6, kind: input, shape index: {}]   ;;  %s3873_s7 = inlined_call_operand.vmem [shape: f32[1,32], index: 7, kind: input, shape index: {}]   ;;  %s3874_s8 = inlined_call_operand.vmem [shape: f32[32,1], index: 8, kind: input, shape index: {}]   ;;  %s3875_s9 = inlined_call_operand.<no memory space> [shape: f32[1,1], index: 9, kind: input, shape index: {}]   ;;  %s3876_s10 = inlined_call_operand.vmem [shape: f32[2,1], index: 10, kind: output, shape index: {}]  }
   0x1   :  { %v15_v0 = vstv %s3875_s9 }
   0x2   :  { %16 = vst [vmem:[#allocation2] sm:$0x1] %v15_v0 }
   0x3   :  { %17 = vsyncpa [#allocation4], 0  ;;  %s2883_s15 = smov [#allocation3]  }
   0x4   :  { %s29_s16 = sshll.u32 %s2883_s15, 4  ;;  %s30_s16 = int_to_ptr.vmem [resolvable:$true] %s29_s16 }
   0x5   :  { %s2869_s17 = scalar_lea.vmem %s30_s16, 4096  ;;  %p2874_p1 = scmp.lt.s32.totalorder %s30_s16, %s30_s16 }
   0x6   :  { %p2870_p0 = scmp.ne.s32.totalorder %s30_s16, %s2869_s17  ;;  %p2875_p2 = scmp.lt.s32.totalorder %s2869_s17, %s2869_s17 }
   0x8   :  { %p2876_p3 = por %p2875_p2, %p2874_p1 }
   0xa   :  { %p2877_p4 = pnand %p2876_p3, %p2870_p0 }
   0xc   :  { %2880 = shalt.err (!%p2877_p4)
}
   0xd   :  { %s2884_s18 = smov 512   ;;  %s2885_s19 = smov 32  }
   0xe   :  { %35 = dma.hbm_to_vmem [thread:$0]  %s3869_s3, 4096, %s30_s16, [#allocation4], %s2884_s18, %s2884_s18, %s2885_s19  }
   0xf   :  { %2881 = dma.done.wait [#allocation4], 4096  }
  0x10   :  { %2882 = vsyncadd [#allocation4], 4294963200  ;;  %v3877_v1 = vmov 0.0   ;;  %vm142_vm0 = vcmask 1041408   ;;  %v111_v4 = vld [vmem:[%s3866_s0] sm:$0xff]  ;;  %vm135_vm1 = vcmask 15360   ;;  %v101_v5 = vlaneseq }
  0x11   :  { %211 = vmatprep.mubr.f32.mxu0 %v3877_v1  ;;  %318 = vmatprep.mubr.f32.mxu1 %v3877_v1  ;;  %v2508_v2 = vld.sshfl [vmem:[%s3867_s1] sm:$0x33 pattern:$0x76325410]  ;;  %v2987_v22 = vld [vmem:[#allocation3 + $0xe8] sm:$0xff]  ;;  %v2995_v25 = vld [vmem:[#allocation3 + $0xf0] sm:$0xff] }
  0x12   :  { %v134_v3 = vcombine.high %v2508_v2, %v2508_v2  ;;  %v2960_v6 = vshrl.u32 %v101_v5, 7  ;;  %v114_v8 = vld [vmem:[%s3868_s2] sm:$0x3]  ;;  %s2887_s2 = smov 64   ;;  %270 = vmatprep.subr.mxu1 %v2987_v22  ;;  %v2997_v26 = vld [vmem:[#allocation3 + $0xc8] sm:$0xff]  ;;  %v3005_v29 = vld [vmem:[#allocation3 + $0xd0] sm:$0xff] }
  0x13   :  { %v2989_v23 = vld [vmem:[#allocation3 + $0xf8] sm:$0xff]  ;;  %v2991_v24 = vld [vmem:[#allocation3 + $0xe0] sm:$0xff]  ;;  %v3007_v30 = vld [vmem:[#allocation3 + $0xa8] sm:$0xff]  ;;  %vm251_vm2 = vcmask 523264   ;;  %vm2888_vm3 = vmmov 0   ;;  %vm2427_vm4 = vcmask 261120  }
  0x14   :  { %2509 = vmatprep.subr.msk.mxu0 %vm142_vm0, %v134_v3  ;;  %v103_v7 = vsub.s32 0, %v2960_v6  ;;  %v107_v13 = vsub.s32 1, %v2960_v6  ;;  %v2999_v27 = vld [vmem:[#allocation3 + $0xd8] sm:$0xff]  ;;  %271 = vmatpush1.msra.mxu1 %v2991_v24  ;;  %v3003_v28 = vld [vmem:[#allocation3 + $0xc0] sm:$0xff]  ;;  %v3015_v33 = vld [vmem:[#allocation3 + $0xb0] sm:$0xff]  ;;  %vm2501_vm5 = vcmask 1024  }
  0x15   :  { %2510 = vmatpush1.msk.msra.mxu0 %vm142_vm0, %v2508_v2  ;;  %272 = vmatprep.subr.mxu1 %v2997_v26  ;;  %v3011_v31 = vld [vmem:[#allocation3 + $0xb8] sm:$0xff]  ;;  %v3013_v32 = vld [vmem:[#allocation3 + $0xa0] sm:$0xff]  ;;  %v3019_v34 = vld [vmem:[#allocation3 + $0x88] sm:$0xff] }
  0x16   :  { %2511 = vmatmul.mubr.msk.f32.vlgmr.msra.gmra.mxu0 %vm135_vm1, %v111_v4  ;;  %v2968_v9 = vrot.slane %v114_v8, %v103_v7  ;;  %v2977_v14 = vrot.slane %v114_v8, %v107_v13  ;;  %341 = vmatprep.subr.mxu0 %v2989_v23  ;;  %v3021_v35 = vld [vmem:[#allocation3 + $0x98] sm:$0xff]  ;;  %v3025_v36 = vld [vmem:[#allocation3 + $0x80] sm:$0xff]  ;;  %v3027_v37 = vld [vmem:[#allocation3 + $0x90] sm:$0xff] }
  0x17   :  { %217 = vmatprep.mubr.f32.mxu0 %v3877_v1  ;;  %342 = vmatpush1.msra.mxu0 %v2995_v25  ;;  %v3031_v38 = vld [vmem:[#allocation3 + $0x68] sm:$0xff]  ;;  %v3033_v39 = vld [vmem:[#allocation3 + $0x78] sm:$0xff]  ;;  %v3037_v40 = vld [vmem:[#allocation3 + $0x60] sm:$0xff] }
  0x18   :  { %3900 = vst [vmem:[#allocation6_spill] sm:$0xff] %v2968_v9  ;;  %3902 = vst [vmem:[#allocation8_spill] sm:$0xff] %v2977_v14  ;;  %343 = vmatprep.subr.mxu0 %v2999_v27  ;;  %273 = vmatpush1.msra.mxu1 %v3003_v28  ;;  %v3039_v41 = vld [vmem:[#allocation3 + $0x70] sm:$0xff]  ;;  %v112_v42 = vld [vmem:[%s3866_s0 + $0x8] sm:$0xff] }
  0x19   :  { %344 = vmatpush1.msra.mxu0 %v3005_v29  ;;  %274 = vmatprep.subr.mxu1 %v3007_v30  ;;  %v3046_v43 = vld [vmem:[#allocation3 + $0x48] sm:$0xff]  ;;  %v3050_v44 = vld [vmem:[#allocation3 + $0x58] sm:$0xff]  ;;  %v3052_v45 = vld [vmem:[#allocation3 + $0x40] sm:$0xff] }
  0x1a   :  { %345 = vmatprep.subr.mxu0 %v3011_v31  ;;  %275 = vmatpush1.msra.mxu1 %v3013_v32  ;;  %3904 = vst [vmem:[#allocation10_spill] sm:$0xff] %v3052_v45  ;;  %v3056_v46 = vld [vmem:[#allocation3 + $0x50] sm:$0xff]  ;;  %v3058_v47 = vld [vmem:[#allocation3 + $0x28] sm:$0xff]  ;;  %v3062_v48 = vld [vmem:[#allocation3 + $0x38] sm:$0xff] }
  0x1b   :  { %346 = vmatpush1.msra.mxu0 %v3015_v33  ;;  %276 = vmatprep.subr.mxu1 %v3019_v34  ;;  %3905 = vst [vmem:[#allocation11_spill] sm:$0xff] %v3058_v47  ;;  %v3064_v49 = vld [vmem:[#allocation3 + $0x20] sm:$0xff]  ;;  %v3068_v50 = vld [vmem:[#allocation3 + $0x30] sm:$0xff]  ;;  %v3070_v51 = vld [vmem:[#allocation3 + $0x8] sm:$0xff] }
  0x1c   :  { %347 = vmatprep.subr.mxu0 %v3021_v35  ;;  %277 = vmatpush1.msra.mxu1 %v3025_v36  ;;  %3906 = vst [vmem:[#allocation12_spill] sm:$0xff] %v3064_v49  ;;  %3907 = vst [vmem:[#allocation13_spill] sm:$0xff] %v3070_v51  ;;  %v3074_v52 = vld [vmem:[#allocation3 + $0x18] sm:$0xff]  ;;  %v3087_v59 = vld [vmem:[#allocation3] sm:$0xff] }
  0x1d   :  { %348 = vmatpush1.msra.mxu0 %v3027_v37  ;;  %278 = vmatprep.subr.mxu1 %v3031_v38  ;;  %3908 = vst [vmem:[#allocation14_spill] sm:$0xff] %v3087_v59  ;;  %v3089_v60 = vld [vmem:[#allocation3 + $0x10] sm:$0xff]  ;;  %v99_v2 = vld [vmem:[%s3871_s5] sm:$0x3] }
  0x1e   :  { %349 = vmatprep.subr.mxu0 %v3033_v39  ;;  %279 = vmatpush1.msra.mxu1 %v3037_v40  ;;  %v3121_v4 = vrot.slane %v99_v2, %v103_v7 }
  0x1f   :  { %350 = vmatpush1.msra.mxu0 %v3039_v41  ;;  %280 = vmatprep.subr.mxu1 %v3046_v43 }
  0x20   :  { %2512 = vmatmul.mubr.msk.f32.gmra.mxu0 %vm135_vm1, %v112_v42  ;;  %351 = vmatprep.subr.mxu0 %v3050_v44  ;;  %3910 = vst [vmem:[#allocation16_spill] sm:$0xff] %v3121_v4 }
  0x21   :  { %281 = vmatpush1.msra.mxu1 %v3052_v45  ;;  %352 = vmatpush1.msra.mxu0 %v3056_v46 }
  0x22   :  { %282 = vmatprep.subr.mxu1 %v3058_v47  ;;  %353 = vmatprep.subr.mxu0 %v3062_v48 }
  0x23   :  { %283 = vmatpush1.msra.mxu1 %v3064_v49  ;;  %354 = vmatpush1.msra.mxu0 %v3068_v50 }
  0x24   :  { %284 = vmatprep.subr.mxu1 %v3070_v51  ;;  %355 = vmatprep.subr.mxu0 %v3074_v52 }
  0x25   :  { %389 = vmatprep.mubr.f32.mxu0 %v3877_v1  ;;  %285 = vmatpush1.msra.mxu1 %v3087_v59 }
  0x26   :  { %356 = vmatpush1.msra.mxu0 %v3089_v60 }
  0x27   :  { %553 = vmatprep.subr.mxu0 %v2987_v22 }
  0xd6   :  { %v213_v10 = vpop.f32.mrf.mxu0 }
  0xd7   :  { %v2971_v11 = vadd.f32 %v213_v10, %v2968_v9 }
  0xd8   :  { %v215_v15 = vpop.f32.mrf.mxu0 }
  0xd9   :  { %3901 = vst [vmem:[#allocation7_spill] sm:$0xff] %v2971_v11  ;;  %v2513_v12 = vmul.f32 -1.442695, %v2971_v11  ;;  %v2980_v16 = vadd.f32 %v215_v15, %v2977_v14 }
  0xdb   :  { %2621 = vpow2.f32 %v2513_v12  ;;  %3903 = vst [vmem:[#allocation9_spill] sm:$0xff] %v2980_v16  ;;  %v2514_v53 = vmul.f32 -1.442695, %v2980_v16 }
  0xdc   :  { %2623 = vtanh.f32 %v2980_v16 }
  0xe0   :  { %v3117_v3 = vpop.f32.mrf.mxu0 }
  0xe1   :  { %3909 = vst [vmem:[#allocation15_spill] sm:$0xff] %v3117_v3 }
  0xe2   :  { %v3123_v5 = vpop.f32.mrf.mxu0 }
  0xe3   :  { %3911 = vst [vmem:[#allocation17_spill] sm:$0xff] %v3123_v5 }
  0xe8   :  { %v2622_v17 = vpop.eup %2621 }
  0xe9   :  { %v232_v18 = vadd.f32 1.0, %v2622_v17  ;;  %v2624_v19 = vpop.eup %2623 }
  0xeb   :  { %2625 = vrcp.f32 %v232_v18 }
  0xec   :  { %2627 = vpow2.f32 %v2514_v53 }
  0xf8   :  { %v2983_v20 = vpop.eup %2625 }
  0xf9   :  { %v240_v21 = vmul.f32 %v2983_v20, %v2624_v19  ;;  %v2628_v54 = vpop.eup %2627  ;;  %v239_v56 = vmul.f32 0.0, %v2983_v20  ;;  %v3129_v20 = vrot.slane %v99_v2, %v107_v13 }
  0xfa   :  { %v233_v55 = vadd.f32 1.0, %v2628_v54 }
  0xfb   :  { %242 = vrot.lane.b32.xlu0 %v240_v21, %s2887_s2  ;;  %3912 = vst [vmem:[#allocation18_spill] sm:$0xff] %v3129_v20 }
  0xfc   :  { %2629 = vrcp.f32 %v233_v55 }
 0x109   :  { %v2630_v61 = vpop.eup %2629 }
 0x16d   :  { %v243_v57 = vpop.permute.xlu0 %242 }
 0x16e   :  { %v3084_v58 = vadd.f32 %v243_v57, %v239_v56 }
 0x170   :  { %2631 = vtanh.f32 %v3084_v58  ;;  %v520_v6 = vrot.slane %v3084_v58, 6  ;;  %v3149_v58 = vld [vmem:[%s3870_s4 + $0x68] sm:$0xff] }
 0x17d   :  { %v2632_v62 = vpop.eup %2631 }
 0x17e   :  { %v247_v63 = vmul.f32 %v2632_v62, %v2630_v61 }
 0x180   :  { %249 = vrot.lane.b32.xlu0 %v247_v63, %s2887_s2 }
 0x1f2   :  { %v250_v0 = vpop.permute.xlu0 %249 }
 0x1f3   :  { %2515 = vmatmul.mubr.msk.f32.vlgmr.msra.gmra.mxu1 %vm251_vm2, %v250_v0  ;;  %2516 = vmatmul.mubr.msk.f32.vlgmr.msra.gmra.mxu0 %vm251_vm2, %v250_v0 }
 0x1f4   :  { %554 = vmatpush1.msra.mxu0 %v2991_v24  ;;  %491 = vmatprep.mubr.f32.mxu1 %v3877_v1 }
 0x1f5   :  { %555 = vmatprep.subr.mxu0 %v2997_v26  ;;  %601 = vmatprep.mubr.f32.mxu0 %v3877_v1 }
 0x1f6   :  { %556 = vmatpush1.msra.mxu0 %v3003_v28 }
 0x1f7   :  { %557 = vmatprep.subr.mxu0 %v3007_v30 }
 0x1f8   :  { %558 = vmatpush1.msra.mxu0 %v3013_v32 }
 0x1f9   :  { %559 = vmatprep.subr.mxu0 %v3019_v34 }
 0x1fa   :  { %560 = vmatpush1.msra.mxu0 %v3025_v36 }
 0x1fb   :  { %561 = vmatprep.subr.mxu0 %v3031_v38 }
 0x1fc   :  { %562 = vmatpush1.msra.mxu0 %v3037_v40 }
 0x1fd   :  { %563 = vmatprep.subr.mxu0 %v3046_v43 }
 0x1fe   :  { %564 = vmatpush1.msra.mxu0 %v3052_v45 }
 0x1ff   :  { %565 = vmatprep.subr.mxu0 %v3058_v47 }
 0x200   :  { %566 = vmatpush1.msra.mxu0 %v3064_v49 }
 0x201   :  { %567 = vmatprep.subr.mxu0 %v3070_v51 }
 0x202   :  { %568 = vmatpush1.msra.mxu0 %v3087_v59 }
 0x2b3   :  { %v320_v8 = vpop.f32.mrf.mxu1  ;;  %v391_v10 = vpop.f32.mrf.mxu0 }
 0x2b4   :  { %v500_v12 = vrot.slane %v320_v8, 6  ;;  %v398_v15 = vadd.f32 %v391_v10, %v3121_v4 }
 0x2b5   :  { %v393_v21 = vpop.f32.mrf.mxu0  ;;  %v322_v7 = vpop.f32.mrf.mxu1 }
 0x2b6   :  { %v504_v17 = vadd.f32 %v500_v12, %v2971_v11  ;;  %v2517_v18 = vmul.f32 -1.442695, %v398_v15  ;;  %v399_v42 = vadd.f32 %v393_v21, %v3129_v20  ;;  %v501_v53 = vrot.slane %v322_v7, 6  ;;  %v3139_v12 = vld [vmem:[%s3870_s4 + $0x78] sm:$0xff]  ;;  %v3144_v15 = vld [vmem:[%s3870_s4 + $0x70] sm:$0xff]  ;;  %v3174_v21 = vld [vmem:[%s3870_s4 + $0x48] sm:$0xff] }
 0x2b7   :  { %3913 = vst [vmem:[#allocation19_spill] sm:$0xff] %v3139_v12  ;;  %443 = vmatprep.subr.mxu1 %v3139_v12  ;;  %726 = vmatprep.subr.mxu0 %v3139_v12  ;;  %v3180_v7 = vld [vmem:[%s3870_s4 + $0x40] sm:$0xff] }
 0x2b8   :  { %v2520_v19 = vmul.f32 -1.442695, %v504_v17  ;;  %2633 = vpow2.f32 %v2517_v18  ;;  %v505_v61 = vadd.f32 %v501_v53, %v2980_v16  ;;  %v3155_v17 = vld [vmem:[%s3870_s4 + $0x60] sm:$0xff]  ;;  %444 = vmatpush1.msra.mxu1 %v3144_v15  ;;  %v3162_v18 = vld [vmem:[%s3870_s4 + $0x58] sm:$0xff] }
 0x2b9   :  { %445 = vmatprep.subr.mxu1 %v3149_v58  ;;  %v3186_v53 = vld [vmem:[%s3870_s4 + $0x38] sm:$0xff] }
 0x2ba   :  { %2635 = vpow2.f32 %v2520_v19  ;;  %v3168_v19 = vld [vmem:[%s3870_s4 + $0x50] sm:$0xff]  ;;  %446 = vmatpush1.msra.mxu1 %v3155_v17 }
 0x2bb   :  { %2637 = vtanh.f32 %v399_v42  ;;  %447 = vmatprep.subr.mxu1 %v3162_v18 }
 0x2bc   :  { %448 = vmatpush1.msra.mxu1 %v3168_v19 }
 0x2bd   :  { %449 = vmatprep.subr.mxu1 %v3174_v21 }
 0x2be   :  { %450 = vmatpush1.msra.mxu1 %v3180_v7 }
 0x2bf   :  { %451 = vmatprep.subr.mxu1 %v3186_v53 }
 0x2c5   :  { %v2634_v54 = vpop.eup %2633 }
 0x2c6   :  { %v406_v55 = vadd.f32 1.0, %v2634_v54  ;;  %v3192_v54 = vld [vmem:[%s3870_s4 + $0x30] sm:$0xff] }
 0x2c7   :  { %v2636_v56 = vpop.eup %2635  ;;  %452 = vmatpush1.msra.mxu1 %v3192_v54 }
 0x2c8   :  { %v512_v57 = vadd.f32 1.0, %v2636_v56  ;;  %2639 = vrcp.f32 %v406_v55  ;;  %v2638_v62 = vpop.eup %2637  ;;  %v3198_v55 = vld [vmem:[%s3870_s4 + $0x28] sm:$0xff]  ;;  %v3204_v56 = vld [vmem:[%s3870_s4 + $0x20] sm:$0xff] }
 0x2c9   :  { %453 = vmatprep.subr.mxu1 %v3198_v55 }
 0x2ca   :  { %2641 = vrcp.f32 %v512_v57  ;;  %v3210_v57 = vld [vmem:[%s3870_s4 + $0x18] sm:$0xff]  ;;  %454 = vmatpush1.msra.mxu1 %v3204_v56 }
 0x2cb   :  { %2643 = vtanh.f32 %v505_v61  ;;  %455 = vmatprep.subr.mxu1 %v3210_v57 }
 0x2d5   :  { %v2640_v63 = vpop.eup %2639 }
 0x2d6   :  { %v414_v13 = vmul.f32 %v2640_v63, %v2638_v62  ;;  %v3216_v62 = vld [vmem:[%s3870_s4 + $0x10] sm:$0xff]  ;;  %v413_v14 = vmul.f32 0.0, %v2640_v63 }
 0x2d7   :  { %v2642_v0 = vpop.eup %2641  ;;  %456 = vmatpush1.msra.mxu1 %v3216_v62 }
 0x2d8   :  { %416 = vrot.lane.b32.xlu1 %v414_v13, %s2887_s2  ;;  %v522_v2 = vmul.f32 %v2642_v0, %v520_v6  ;;  %v2644_v8 = vpop.eup %2643  ;;  %v3222_v6 = vld [vmem:[%s3870_s4 + $0x8] sm:$0xff]  ;;  %v3228_v13 = vld [vmem:[%s3870_s4] sm:$0xff] }
 0x2d9   :  { %v523_v10 = vmul.f32 %v2644_v8, %v2642_v0  ;;  %457 = vmatprep.subr.mxu1 %v3222_v6  ;;  %v2518_v0 = vmul.f32 -1.442695, %v399_v42  ;;  %v2521_v8 = vmul.f32 -1.442695, %v505_v61 }
 0x2da   :  { %458 = vmatpush1.msra.mxu1 %v3228_v13 }
 0x2db   :  { %624 = vmatprep.subr.mxu1 %v2989_v23  ;;  %2645 = vpow2.f32 %v2518_v0 }
 0x2dc   :  { %525 = vrot.lane.b32.xlu1 %v523_v10, %s2887_s2  ;;  %2647 = vpow2.f32 %v2521_v8 }
 0x2e8   :  { %v2646_v10 = vpop.eup %2645 }
 0x2e9   :  { %v407_v1 = vadd.f32 1.0, %v2646_v10  ;;  %v2648_v5 = vpop.eup %2647 }
 0x2ea   :  { %v513_v20 = vadd.f32 1.0, %v2648_v5 }
 0x2eb   :  { %2649 = vrcp.f32 %v407_v1 }
 0x2f8   :  { %v2650_v42 = vpop.eup %2649 }
 0x34a   :  { %v417_v3 = vpop.permute.xlu1 %416 }
 0x34b   :  { %v3234_v9 = vadd.f32 %v417_v3, %v413_v14 }
 0x34d   :  { %2651 = vtanh.f32 %v3234_v9 }
 0x34e   :  { %v526_v16 = vpop.permute.xlu1 %525  ;;  %2653 = vrcp.f32 %v513_v20 }
 0x34f   :  { %v3237_v4 = vadd.f32 %v526_v16, %v522_v2  ;;  %v3914_v16 = vmov 0.0  }
 0x351   :  { %2655 = vtanh.f32 %v3237_v4 }
 0x35a   :  { %v2652_v61 = vpop.eup %2651 }
 0x35b   :  { %v421_v0 = vmul.f32 %v2652_v61, %v2650_v42  ;;  %v2654_v8 = vpop.eup %2653 }
 0x35d   :  { %423 = vrot.lane.b32.xlu0 %v421_v0, %s2887_s2 }
 0x35e   :  { %v2656_v63 = vpop.eup %2655 }
 0x35f   :  { %v530_v10 = vmul.f32 %v2656_v63, %v2654_v8 }
 0x361   :  { %v532_v14 = vrot.slane %v530_v10, 2 }
 0x363   :  { %533 = vrot.lane.b32.xlu1 %v532_v14, %s2887_s2  ;;  %v3915_v14 = vld [vmem:[#allocation16_spill] sm:$0xff] }
 0x3cf   :  { %v424_v1 = vpop.permute.xlu0 %423 }
 0x3d0   :  { %2519 = vmatmul.mubr.msk.f32.vlgmr.msra.gmra.mxu1 %vm251_vm2, %v424_v1 }
 0x3d1   :  { %625 = vmatpush1.msra.mxu1 %v2995_v25  ;;  %672 = vmatprep.mubr.f32.mxu1 %v3914_v16 }
 0x3d2   :  { %626 = vmatprep.subr.mxu1 %v2999_v27 }
 0x3d3   :  { %627 = vmatpush1.msra.mxu1 %v3005_v29 }
 0x3d4   :  { %628 = vmatprep.subr.mxu1 %v3011_v31 }
 0x3d5   :  { %629 = vmatpush1.msra.mxu1 %v3015_v33  ;;  %v534_v3 = vpop.permute.xlu1 %533 }
 0x3d6   :  { %630 = vmatprep.subr.mxu1 %v3021_v35  ;;  %2522 = vmatmul.mubr.msk.f32.vlgmr.msra.gmra.mxu0 %vm251_vm2, %v534_v3 }
 0x3d7   :  { %631 = vmatpush1.msra.mxu1 %v3027_v37  ;;  %727 = vmatpush1.msra.mxu0 %v3144_v15 }
 0x3d8   :  { %632 = vmatprep.subr.mxu1 %v3033_v39  ;;  %728 = vmatprep.subr.mxu0 %v3149_v58 }
 0x3d9   :  { %633 = vmatpush1.msra.mxu1 %v3039_v41  ;;  %729 = vmatpush1.msra.mxu0 %v3155_v17 }
 0x3da   :  { %634 = vmatprep.subr.mxu1 %v3050_v44  ;;  %730 = vmatprep.subr.mxu0 %v3162_v18 }
 0x3db   :  { %635 = vmatpush1.msra.mxu1 %v3056_v46  ;;  %731 = vmatpush1.msra.mxu0 %v3168_v19 }
 0x3dc   :  { %636 = vmatprep.subr.mxu1 %v3062_v48  ;;  %732 = vmatprep.subr.mxu0 %v3174_v21 }
 0x3dd   :  { %637 = vmatpush1.msra.mxu1 %v3068_v50  ;;  %733 = vmatpush1.msra.mxu0 %v3180_v7 }
 0x3de   :  { %638 = vmatprep.subr.mxu1 %v3074_v52  ;;  %734 = vmatprep.subr.mxu0 %v3186_v53 }
 0x3df   :  { %639 = vmatpush1.msra.mxu1 %v3089_v60  ;;  %735 = vmatpush1.msra.mxu0 %v3192_v54 }
 0x3e0   :  { %2523 = vmatmul.mubr.msk.f32.vlgmr.msra.gmra.mxu1 %vm251_vm2, %v534_v3  ;;  %836 = vmatprep.subr.mxu1 %v2987_v22 }
 0x3e1   :  { %837 = vmatpush1.msra.mxu1 %v2991_v24  ;;  %884 = vmatprep.mubr.f32.mxu1 %v3914_v16 }
 0x3e2   :  { %838 = vmatprep.subr.mxu1 %v2997_v26  ;;  %736 = vmatprep.subr.mxu0 %v3198_v55 }
 0x3e3   :  { %839 = vmatpush1.msra.mxu1 %v3003_v28  ;;  %737 = vmatpush1.msra.mxu0 %v3204_v56 }
 0x3e4   :  { %840 = vmatprep.subr.mxu1 %v3007_v30  ;;  %738 = vmatprep.subr.mxu0 %v3210_v57 }
 0x3e5   :  { %841 = vmatpush1.msra.mxu1 %v3013_v32  ;;  %739 = vmatpush1.msra.mxu0 %v3216_v62 }
 0x3e6   :  { %842 = vmatprep.subr.mxu1 %v3019_v34  ;;  %740 = vmatprep.subr.mxu0 %v3222_v6 }
 0x3e7   :  { %843 = vmatpush1.msra.mxu1 %v3025_v36  ;;  %741 = vmatpush1.msra.mxu0 %v3228_v13 }
 0x3e8   :  { %844 = vmatprep.subr.mxu1 %v3031_v38  ;;  %774 = vmatprep.mubr.f32.mxu0 %v3914_v16 }
 0x3e9   :  { %845 = vmatpush1.msra.mxu1 %v3037_v40  ;;  %907 = vmatprep.subr.mxu0 %v2989_v23 }
 0x3ea   :  { %846 = vmatprep.subr.mxu1 %v3046_v43 }
 0x3eb   :  { %847 = vmatpush1.msra.mxu1 %v3052_v45 }
 0x3ec   :  { %848 = vmatprep.subr.mxu1 %v3058_v47 }
 0x3ed   :  { %849 = vmatpush1.msra.mxu1 %v3064_v49 }
 0x3ee   :  { %850 = vmatprep.subr.mxu1 %v3070_v51  ;;  %v3916_v51 = vld [vmem:[#allocation9_spill] sm:$0xff] }
 0x3ef   :  { %851 = vmatpush1.msra.mxu1 %v3087_v59 }
 0x3f0   :  { %1009 = vmatprep.subr.mxu1 %v3139_v12 }
 0x490   :  { %v493_v42 = vpop.f32.mrf.mxu1 }
 0x492   :  { %v495_v0 = vpop.f32.mrf.mxu1 }
 0x496   :  { %v603_v5 = vpop.f32.mrf.mxu0 }
 0x497   :  { %v783_v20 = vrot.slane %v603_v5, 4 }
 0x498   :  { %v605_v63 = vpop.f32.mrf.mxu0 }
 0x499   :  { %v787_v2 = vadd.f32 %v783_v20, %v2971_v11  ;;  %v784_v3 = vrot.slane %v605_v63, 4  ;;  %v3917_v20 = vld [vmem:[#allocation18_spill] sm:$0xff] }
 0x49b   :  { %v2527_v61 = vmul.f32 -1.442695, %v787_v2  ;;  %v788_v59 = vadd.f32 %v784_v3, %v3916_v51 }
 0x49d   :  { %2657 = vpow2.f32 %v2527_v61 }
 0x4a0   :  { %v674_v8 = vpop.f32.mrf.mxu1 }
 0x4a1   :  { %v679_v10 = vadd.f32 %v674_v8, %v493_v42  ;;  %v803_v8 = vrot.slane %v3237_v4, 6 }
 0x4a2   :  { %v676_v45 = vpop.f32.mrf.mxu1 }
 0x4a3   :  { %v681_v1 = vadd.f32 %v679_v10, %v3915_v14  ;;  %v680_v5 = vadd.f32 %v676_v45, %v495_v0  ;;  %v2528_v45 = vmul.f32 -1.442695, %v788_v59 }
 0x4a5   :  { %v2524_v49 = vmul.f32 -1.442695, %v681_v1  ;;  %v682_v2 = vadd.f32 %v680_v5, %v3917_v20 }
 0x4a7   :  { %2659 = vpow2.f32 %v2524_v49 }
 0x4a8   :  { %2661 = vtanh.f32 %v788_v59 }
 0x4aa   :  { %v2658_v47 = vpop.eup %2657 }
 0x4ab   :  { %v795_v12 = vadd.f32 1.0, %v2658_v47 }
 0x4ad   :  { %2663 = vrcp.f32 %v795_v12  ;;  %v2525_v12 = vmul.f32 -1.442695, %v682_v2 }
 0x4ae   :  { %2665 = vtanh.f32 %v682_v2 }
 0x4b4   :  { %v2660_v61 = vpop.eup %2659 }
 0x4b5   :  { %v689_v11 = vadd.f32 1.0, %v2660_v61  ;;  %v2662_v42 = vpop.eup %2661 }
 0x4b7   :  { %2667 = vrcp.f32 %v689_v11 }
 0x4b8   :  { %2669 = vpow2.f32 %v2528_v45 }
 0x4b9   :  { %2671 = vpow2.f32 %v2525_v12 }
 0x4ba   :  { %v2664_v63 = vpop.eup %2663 }
 0x4bb   :  { %v806_v10 = vmul.f32 %v2664_v63, %v2662_v42  ;;  %v805_v49 = vmul.f32 %v2664_v63, %v803_v8  ;;  %v2666_v1 = vpop.eup %2665 }
 0x4bd   :  { %808 = vrot.lane.b32.xlu1 %v806_v10, %s2887_s2 }
 0x4c4   :  { %v2668_v47 = vpop.eup %2667 }
 0x4c5   :  { %v697_v3 = vmul.f32 %v2668_v47, %v2666_v1  ;;  %v2670_v0 = vpop.eup %2669  ;;  %v696_v8 = vmul.f32 %v2668_v47, %v3234_v9  ;;  %v3918_v47 = vld [vmem:[#allocation10_spill] sm:$0xff] }
 0x4c6   :  { %v796_v5 = vadd.f32 1.0, %v2670_v0  ;;  %v2672_v4 = vpop.eup %2671 }
 0x4c7   :  { %699 = vrot.lane.b32.xlu0 %v697_v3, %s2887_s2  ;;  %v690_v42 = vadd.f32 1.0, %v2672_v4  ;;  %v3921_v4 = vld [vmem:[#allocation13_spill] sm:$0xff] }
 0x4c8   :  { %2673 = vrcp.f32 %v796_v5  ;;  %v3919_v5 = vld [vmem:[#allocation11_spill] sm:$0xff] }
 0x4d5   :  { %v2674_v59 = vpop.eup %2673 }
 0x52f   :  { %v809_v11 = vpop.permute.xlu1 %808 }
 0x530   :  { %v3303_v61 = vadd.f32 %v809_v11, %v805_v49  ;;  %v3920_v11 = vld [vmem:[#allocation12_spill] sm:$0xff] }
 0x532   :  { %2675 = vtanh.f32 %v3303_v61 }
 0x533   :  { %2677 = vrcp.f32 %v690_v42  ;;  %v3922_v42 = vld [vmem:[#allocation14_spill] sm:$0xff] }
 0x539   :  { %v700_v63 = vpop.permute.xlu0 %699 }
 0x53a   :  { %v3307_v10 = vadd.f32 %v700_v63, %v696_v8  ;;  %v3923_v8 = vld [vmem:[#allocation19_spill] sm:$0xff] }
 0x53c   :  { %2679 = vtanh.f32 %v3307_v10 }
 0x53f   :  { %v2676_v2 = vpop.eup %2675 }
 0x540   :  { %v813_v1 = vmul.f32 %v2676_v2, %v2674_v59  ;;  %v2678_v49 = vpop.eup %2677  ;;  %v3924_v2 = vld [vmem:[#allocation7_spill] sm:$0xff] }
 0x542   :  { %v815_v3 = vrot.slane %v813_v1, 4 }
 0x544   :  { %816 = vrot.lane.b32.xlu1 %v815_v3, %s2887_s2 }
 0x549   :  { %v2680_v45 = vpop.eup %2679 }
 0x54a   :  { %v704_v12 = vmul.f32 %v2680_v45, %v2678_v49 }
 0x54c   :  { %706 = vrot.lane.b32.xlu0 %v704_v12, %s2887_s2 }
 0x5b6   :  { %v817_v0 = vpop.permute.xlu1 %816 }
 0x5b7   :  { %2529 = vmatmul.mubr.msk.f32.vlgmr.msra.gmra.mxu1 %vm251_vm2, %v817_v0 }
 0x5b8   :  { %1010 = vmatpush1.msra.mxu1 %v3144_v15  ;;  %1057 = vmatprep.mubr.f32.mxu1 %v3914_v16 }
 0x5b9   :  { %1011 = vmatprep.subr.mxu1 %v3149_v58 }
 0x5ba   :  { %1012 = vmatpush1.msra.mxu1 %v3155_v17 }
 0x5bb   :  { %1013 = vmatprep.subr.mxu1 %v3162_v18 }
 0x5bc   :  { %1014 = vmatpush1.msra.mxu1 %v3168_v19 }
 0x5bd   :  { %1015 = vmatprep.subr.mxu1 %v3174_v21 }
 0x5be   :  { %v707_v9 = vpop.permute.xlu0 %706  ;;  %1016 = vmatpush1.msra.mxu1 %v3180_v7 }
 0x5bf   :  { %2526 = vmatmul.mubr.msk.f32.vlgmr.msra.gmra.mxu0 %vm251_vm2, %v707_v9  ;;  %1017 = vmatprep.subr.mxu1 %v3186_v53 }
 0x5c0   :  { %908 = vmatpush1.msra.mxu0 %v2995_v25  ;;  %955 = vmatprep.mubr.f32.mxu0 %v3914_v16 }
 0x5c1   :  { %909 = vmatprep.subr.mxu0 %v2999_v27  ;;  %1018 = vmatpush1.msra.mxu1 %v3192_v54 }
 0x5c2   :  { %910 = vmatpush1.msra.mxu0 %v3005_v29  ;;  %1019 = vmatprep.subr.mxu1 %v3198_v55 }
 0x5c3   :  { %911 = vmatprep.subr.mxu0 %v3011_v31  ;;  %1020 = vmatpush1.msra.mxu1 %v3204_v56 }
 0x5c4   :  { %912 = vmatpush1.msra.mxu0 %v3015_v33  ;;  %1021 = vmatprep.subr.mxu1 %v3210_v57 }
 0x5c5   :  { %913 = vmatprep.subr.mxu0 %v3021_v35  ;;  %1022 = vmatpush1.msra.mxu1 %v3216_v62 }
 0x5c6   :  { %914 = vmatpush1.msra.mxu0 %v3027_v37  ;;  %1023 = vmatprep.subr.mxu1 %v3222_v6 }
 0x5c7   :  { %915 = vmatprep.subr.mxu0 %v3033_v39  ;;  %1024 = vmatpush1.msra.mxu1 %v3228_v13 }
 0x5c8   :  { %916 = vmatpush1.msra.mxu0 %v3039_v41  ;;  %1190 = vmatprep.subr.mxu1 %v2989_v23 }
 0x5c9   :  { %917 = vmatprep.subr.mxu0 %v3050_v44 }
 0x5ca   :  { %918 = vmatpush1.msra.mxu0 %v3056_v46 }
 0x5cb   :  { %919 = vmatprep.subr.mxu0 %v3062_v48 }
 0x5cc   :  { %920 = vmatpush1.msra.mxu0 %v3068_v50 }
 0x5cd   :  { %921 = vmatprep.subr.mxu0 %v3074_v52 }
 0x5ce   :  { %922 = vmatpush1.msra.mxu0 %v3089_v60 }
 0x5cf   :  { %2530 = vmatmul.mubr.msk.f32.vlgmr.msra.gmra.mxu0 %vm251_vm2, %v817_v0  ;;  %1119 = vmatprep.subr.mxu0 %v2987_v22 }
 0x5d0   :  { %1120 = vmatpush1.msra.mxu0 %v2991_v24  ;;  %1167 = vmatprep.mubr.f32.mxu0 %v3914_v16 }
 0x5d1   :  { %1121 = vmatprep.subr.mxu0 %v2997_v26 }
 0x5d2   :  { %1122 = vmatpush1.msra.mxu0 %v3003_v28 }
 0x5d3   :  { %1123 = vmatprep.subr.mxu0 %v3007_v30 }
 0x5d4   :  { %1124 = vmatpush1.msra.mxu0 %v3013_v32 }
 0x5d5   :  { %1125 = vmatprep.subr.mxu0 %v3019_v34 }
 0x5d6   :  { %1126 = vmatpush1.msra.mxu0 %v3025_v36 }
 0x5d7   :  { %1127 = vmatprep.subr.mxu0 %v3031_v38 }
 0x5d8   :  { %1128 = vmatpush1.msra.mxu0 %v3037_v40 }
 0x5d9   :  { %1129 = vmatprep.subr.mxu0 %v3046_v43 }
 0x5da   :  { %1130 = vmatpush1.msra.mxu0 %v3918_v47 }
 0x5db   :  { %1131 = vmatprep.subr.mxu0 %v3919_v5 }
 0x5dc   :  { %1132 = vmatpush1.msra.mxu0 %v3920_v11 }
 0x5dd   :  { %1133 = vmatprep.subr.mxu0 %v3921_v4 }
 0x5de   :  { %1134 = vmatpush1.msra.mxu0 %v3922_v42 }
 0x5df   :  { %1292 = vmatprep.subr.mxu0 %v3923_v8 }
 0x677   :  { %v886_v63 = vpop.f32.mrf.mxu1 }
 0x678   :  { %v1066_v59 = vrot.slane %v886_v63, 2 }
 0x679   :  { %v888_v49 = vpop.f32.mrf.mxu1 }
 0x67a   :  { %v1070_v1 = vadd.f32 %v1066_v59, %v3924_v2  ;;  %v1067_v45 = vrot.slane %v888_v49, 2  ;;  %v1086_v59 = vrot.slane %v3303_v61, 6 }
 0x67c   :  { %v2534_v3 = vmul.f32 -1.442695, %v1070_v1  ;;  %v1071_v12 = vadd.f32 %v1067_v45, %v3916_v51 }
 0x67e   :  { %2681 = vpow2.f32 %v2534_v3 }
 0x67f   :  { %v776_v0 = vpop.f32.mrf.mxu0  ;;  %2683 = vtanh.f32 %v1071_v12 }
 0x681   :  { %v778_v11 = vpop.f32.mrf.mxu0 }
 0x68b   :  { %v2682_v9 = vpop.eup %2681 }
 0x68c   :  { %v1078_v5 = vadd.f32 1.0, %v2682_v9  ;;  %v2684_v63 = vpop.eup %2683 }
 0x68e   :  { %2685 = vrcp.f32 %v1078_v5 }
 0x68f   :  { %v957_v4 = vpop.f32.mrf.mxu0 }
 0x690   :  { %v962_v42 = vadd.f32 %v957_v4, %v776_v0 }
 0x691   :  { %v959_v2 = vpop.f32.mrf.mxu0 }
 0x692   :  { %v964_v8 = vadd.f32 %v962_v42, %v3915_v14  ;;  %v963_v51 = vadd.f32 %v959_v2, %v778_v11 }
 0x694   :  { %v2531_v47 = vmul.f32 -1.442695, %v964_v8  ;;  %v965_v45 = vadd.f32 %v963_v51, %v3917_v20 }
 0x696   :  { %2687 = vpow2.f32 %v2531_v47  ;;  %v2535_v47 = vmul.f32 -1.442695, %v1071_v12  ;;  %v2532_v11 = vmul.f32 -1.442695, %v965_v45 }
 0x697   :  { %2689 = vtanh.f32 %v965_v45 }
 0x69b   :  { %v2686_v1 = vpop.eup %2685 }
 0x69c   :  { %v1089_v3 = vmul.f32 %v2686_v1, %v2684_v63  ;;  %v1088_v49 = vmul.f32 %v2686_v1, %v1086_v59 }
 0x69e   :  { %1091 = vrot.lane.b32.xlu1 %v1089_v3, %s2887_s2 }
 0x6a3   :  { %v2688_v9 = vpop.eup %2687 }
 0x6a4   :  { %v972_v5 = vadd.f32 1.0, %v2688_v9  ;;  %v2690_v4 = vpop.eup %2689 }
 0x6a6   :  { %2691 = vrcp.f32 %v972_v5 }
 0x6a7   :  { %2693 = vpow2.f32 %v2535_v47 }
 0x6b3   :  { %v2692_v42 = vpop.eup %2691 }
 0x6b4   :  { %v980_v8 = vmul.f32 %v2692_v42, %v2690_v4  ;;  %v2694_v61 = vpop.eup %2693  ;;  %v979_v12 = vmul.f32 %v2692_v42, %v3307_v10 }
 0x6b5   :  { %v1079_v0 = vadd.f32 1.0, %v2694_v61 }
 0x6b6   :  { %982 = vrot.lane.b32.xlu0 %v980_v8, %s2887_s2 }
 0x6b7   :  { %2695 = vrcp.f32 %v1079_v0 }
 0x6c4   :  { %v2696_v2 = vpop.eup %2695 }
 0x710   :  { %v1092_v63 = vpop.permute.xlu1 %1091 }
 0x711   :  { %v3373_v59 = vadd.f32 %v1092_v63, %v1088_v49 }
 0x713   :  { %2697 = vtanh.f32 %v3373_v59 }
 0x714   :  { %2699 = vpow2.f32 %v2532_v11 }
 0x720   :  { %v2698_v1 = vpop.eup %2697 }
 0x721   :  { %v1096_v3 = vmul.f32 %v2698_v1, %v2696_v2  ;;  %v2700_v51 = vpop.eup %2699 }
 0x722   :  { %v973_v5 = vadd.f32 1.0, %v2700_v51 }
 0x723   :  { %v1098_v9 = vrot.slane %v1096_v3, 6 }
 0x724   :  { %2701 = vrcp.f32 %v973_v5 }
 0x725   :  { %1099 = vrot.lane.b32.xlu1 %v1098_v9, %s2887_s2 }
 0x728   :  { %v983_v4 = vpop.permute.xlu0 %982 }
 0x729   :  { %v3378_v8 = vadd.f32 %v983_v4, %v979_v12 }
 0x72b   :  { %2703 = vtanh.f32 %v3378_v8 }
 0x731   :  { %v2702_v49 = vpop.eup %2701 }
 0x738   :  { %v2704_v45 = vpop.eup %2703 }
 0x739   :  { %v987_v47 = vmul.f32 %v2704_v45, %v2702_v49 }
 0x73b   :  { %989 = vrot.lane.b32.xlu0 %v987_v47, %s2887_s2 }
 0x797   :  { %v1100_v61 = vpop.permute.xlu1 %1099 }
 0x798   :  { %2536 = vmatmul.mubr.msk.f32.vlgmr.msra.gmra.mxu0 %vm251_vm2, %v1100_v61 }
 0x799   :  { %1293 = vmatpush1.msra.mxu0 %v3144_v15  ;;  %1340 = vmatprep.mubr.f32.mxu0 %v3914_v16 }
 0x79a   :  { %1294 = vmatprep.subr.mxu0 %v3149_v58 }
 0x79b   :  { %1295 = vmatpush1.msra.mxu0 %v3155_v17 }
 0x79c   :  { %1296 = vmatprep.subr.mxu0 %v3162_v18 }
 0x79d   :  { %1297 = vmatpush1.msra.mxu0 %v3168_v19 }
 0x79e   :  { %1298 = vmatprep.subr.mxu0 %v3174_v21 }
 0x79f   :  { %1299 = vmatpush1.msra.mxu0 %v3180_v7 }
 0x7a0   :  { %1300 = vmatprep.subr.mxu0 %v3186_v53 }
 0x7a1   :  { %1301 = vmatpush1.msra.mxu0 %v3192_v54 }
 0x7a2   :  { %1302 = vmatprep.subr.mxu0 %v3198_v55 }
 0x7a3   :  { %1303 = vmatpush1.msra.mxu0 %v3204_v56 }
 0x7a4   :  { %1304 = vmatprep.subr.mxu0 %v3210_v57 }
 0x7a5   :  { %1305 = vmatpush1.msra.mxu0 %v3216_v62 }
 0x7a6   :  { %1306 = vmatprep.subr.mxu0 %v3222_v6 }
 0x7a7   :  { %1307 = vmatpush1.msra.mxu0 %v3228_v13 }
 0x7a8   :  { %1466 = vmatprep.subr.mxu0 %v2989_v23  ;;  %v3926_v23 = vld [vmem:[#allocation11_spill] sm:$0xff] }
 0x7ad   :  { %v990_v10 = vpop.permute.xlu0 %989 }
 0x7ae   :  { %2533 = vmatmul.mubr.msk.f32.vlgmr.msra.gmra.mxu1 %vm251_vm2, %v990_v10 }
 0x7af   :  { %1191 = vmatpush1.msra.mxu1 %v2995_v25  ;;  %1238 = vmatprep.mubr.f32.mxu1 %v3914_v16  ;;  %v3928_v25 = vld [vmem:[#allocation13_spill] sm:$0xff] }
 0x7b0   :  { %1192 = vmatprep.subr.mxu1 %v2999_v27  ;;  %v3930_v27 = vld [vmem:[#allocation19_spill] sm:$0xff] }
 0x7b1   :  { %1193 = vmatpush1.msra.mxu1 %v3005_v29  ;;  %v3932_v29 = vld [vmem:[#allocation15_spill] sm:$0xff] }
 0x7b2   :  { %1194 = vmatprep.subr.mxu1 %v3011_v31 }
 0x7b3   :  { %1195 = vmatpush1.msra.mxu1 %v3015_v33 }
 0x7b4   :  { %1196 = vmatprep.subr.mxu1 %v3021_v35  ;;  %v3933_v35 = vld [vmem:[#allocation8_spill] sm:$0xff] }
 0x7b5   :  { %1197 = vmatpush1.msra.mxu1 %v3027_v37 }
 0x7b6   :  { %1198 = vmatprep.subr.mxu1 %v3033_v39 }
 0x7b7   :  { %1199 = vmatpush1.msra.mxu1 %v3039_v41 }
 0x7b8   :  { %1200 = vmatprep.subr.mxu1 %v3050_v44  ;;  %v1363_v44 = vrot.slane %v3373_v59, 6 }
 0x7b9   :  { %1201 = vmatpush1.msra.mxu1 %v3056_v46 }
 0x7ba   :  { %1202 = vmatprep.subr.mxu1 %v3062_v48 }
 0x7bb   :  { %1203 = vmatpush1.msra.mxu1 %v3068_v50 }
 0x7bc   :  { %1204 = vmatprep.subr.mxu1 %v3074_v52 }
 0x7bd   :  { %1205 = vmatpush1.msra.mxu1 %v3089_v60 }
 0x7be   :  { %2537 = vmatmul.mubr.msk.f32.vlgmr.msra.gmra.mxu1 %vm251_vm2, %v1100_v61  ;;  %1395 = vmatprep.subr.mxu1 %v2987_v22  ;;  %v3925_v22 = vld [vmem:[#allocation10_spill] sm:$0xff] }
 0x7bf   :  { %1396 = vmatpush1.msra.mxu1 %v2991_v24  ;;  %1443 = vmatprep.mubr.f32.mxu1 %v3914_v16  ;;  %v3927_v24 = vld [vmem:[#allocation12_spill] sm:$0xff] }
 0x7c0   :  { %1397 = vmatprep.subr.mxu1 %v2997_v26  ;;  %v3929_v26 = vld [vmem:[#allocation14_spill] sm:$0xff] }
 0x7c1   :  { %1398 = vmatpush1.msra.mxu1 %v3003_v28  ;;  %v3931_v28 = vld [vmem:[#allocation6_spill] sm:$0xff] }
 0x7c2   :  { %1399 = vmatprep.subr.mxu1 %v3007_v30  ;;  %v3438_v30 = vadd.f32 %v3932_v29, %v3931_v28 }
 0x7c3   :  { %1400 = vmatpush1.msra.mxu1 %v3013_v32 }
 0x7c4   :  { %1401 = vmatprep.subr.mxu1 %v3019_v34 }
 0x7c5   :  { %1402 = vmatpush1.msra.mxu1 %v3025_v36  ;;  %v3934_v36 = vld [vmem:[#allocation17_spill] sm:$0xff] }
 0x7c6   :  { %1403 = vmatprep.subr.mxu1 %v3031_v38  ;;  %v3443_v37 = vadd.f32 %v3934_v36, %v3933_v35  ;;  %v3524_v35 = vld [vmem:[#allocation3 + $0x10] sm:$0xff]  ;;  %v3528_v36 = vld [vmem:[#allocation3 + $0xe8] sm:$0xff] }
 0x7c7   :  { %1404 = vmatpush1.msra.mxu1 %v3037_v40 }
 0x7c8   :  { %1405 = vmatprep.subr.mxu1 %v3046_v43 }
 0x7c9   :  { %1406 = vmatpush1.msra.mxu1 %v3925_v22 }
 0x7ca   :  { %1407 = vmatprep.subr.mxu1 %v3926_v23 }
 0x7cb   :  { %1408 = vmatpush1.msra.mxu1 %v3927_v24 }
 0x7cc   :  { %1409 = vmatprep.subr.mxu1 %v3928_v25 }
 0x7cd   :  { %1410 = vmatpush1.msra.mxu1 %v3929_v26 }
 0x7ce   :  { %1568 = vmatprep.subr.mxu1 %v3930_v27 }
 0x858   :  { %v1169_v31 = vpop.f32.mrf.mxu0 }
 0x859   :  { %v1347_v32 = vadd.f32 %v1169_v31, %v3438_v30 }
 0x85a   :  { %v1171_v34 = vpop.f32.mrf.mxu0 }
 0x85b   :  { %v2541_v33 = vmul.f32 -1.442695, %v1347_v32  ;;  %v1348_v38 = vadd.f32 %v1171_v34, %v3443_v37 }
 0x85d   :  { %2705 = vpow2.f32 %v2541_v33  ;;  %v2542_v12 = vmul.f32 -1.442695, %v1348_v38 }
 0x85e   :  { %2707 = vtanh.f32 %v1348_v38  ;;  %v3531_v38 = vld [vmem:[#allocation3 + $0xe0] sm:$0xff] }
 0x86a   :  { %v2706_v39 = vpop.eup %2705 }
 0x86b   :  { %v1355_v40 = vadd.f32 1.0, %v2706_v39  ;;  %v2708_v43 = vpop.eup %2707  ;;  %v3535_v39 = vld [vmem:[#allocation3 + $0xc8] sm:$0xff] }
 0x86d   :  { %2709 = vrcp.f32 %v1355_v40  ;;  %v3538_v40 = vld [vmem:[#allocation3 + $0xc0] sm:$0xff] }
 0x86e   :  { %v1059_v41 = vpop.f32.mrf.mxu1 }
 0x870   :  { %v1061_v52 = vpop.f32.mrf.mxu1 }
 0x87a   :  { %v2710_v46 = vpop.eup %2709 }
 0x87b   :  { %v1366_v48 = vmul.f32 %v2710_v46, %v2708_v43  ;;  %v1365_v50 = vmul.f32 %v2710_v46, %v1363_v44  ;;  %v3544_v43 = vld [vmem:[#allocation3 + $0xa0] sm:$0xff]  ;;  %v3547_v44 = vld [vmem:[#allocation3 + $0x88] sm:$0xff] }
 0x87c   :  { %v3550_v46 = vld [vmem:[#allocation3 + $0x80] sm:$0xff] }
 0x87d   :  { %1368 = vrot.lane.b32.xlu1 %v1366_v48, %s2887_s2  ;;  %v3553_v48 = vld [vmem:[#allocation3 + $0x68] sm:$0xff] }
 0x87e   :  { %v1240_v60 = vpop.f32.mrf.mxu1 }
 0x87f   :  { %v1245_v42 = vadd.f32 %v1240_v60, %v1059_v41  ;;  %v3541_v41 = vld [vmem:[#allocation3 + $0xa8] sm:$0xff]  ;;  %v3562_v60 = vld [vmem:[#allocation3 + $0x40] sm:$0xff] }
 0x880   :  { %v1242_v11 = vpop.f32.mrf.mxu1 }
 0x881   :  { %v1247_v0 = vadd.f32 %v1245_v42, %v3915_v14  ;;  %v1246_v2 = vadd.f32 %v1242_v11, %v1061_v52  ;;  %v3559_v52 = vld [vmem:[#allocation3 + $0x48] sm:$0xff]  ;;  %v3574_v11 = vld [vmem:[#allocation3] sm:$0xff] }
 0x882   :  { %v3565_v42 = vld [vmem:[#allocation3 + $0x28] sm:$0xff] }
 0x883   :  { %v2538_v63 = vmul.f32 -1.442695, %v1247_v0  ;;  %v1248_v1 = vadd.f32 %v1246_v2, %v3917_v20  ;;  %v3568_v0 = vld [vmem:[#allocation3 + $0x20] sm:$0xff] }
 0x885   :  { %2711 = vpow2.f32 %v2538_v63  ;;  %v2539_v23 = vmul.f32 -1.442695, %v1248_v1  ;;  %v3571_v63 = vld [vmem:[#allocation3 + $0x8] sm:$0xff] }
 0x886   :  { %2713 = vtanh.f32 %v1248_v1 }
 0x892   :  { %v2712_v3 = vpop.eup %2711 }
 0x893   :  { %v1255_v51 = vadd.f32 1.0, %v2712_v3  ;;  %v2714_v59 = vpop.eup %2713 }
 0x895   :  { %2715 = vrcp.f32 %v1255_v51 }
 0x896   :  { %2717 = vpow2.f32 %v2542_v12 }
 0x8a2   :  { %v2716_v9 = vpop.eup %2715 }
 0x8a3   :  { %v1263_v5 = vmul.f32 %v2716_v9, %v2714_v59  ;;  %v2718_v4 = vpop.eup %2717  ;;  %v1262_v26 = vmul.f32 %v2716_v9, %v3378_v8  ;;  %v3521_v8 = vld [vmem:[#allocation3 + $0x18] sm:$0xff] }
 0x8a4   :  { %v1356_v49 = vadd.f32 1.0, %v2718_v4 }
 0x8a5   :  { %1265 = vrot.lane.b32.xlu0 %v1263_v5, %s2887_s2 }
 0x8a6   :  { %2719 = vrcp.f32 %v1356_v49 }
 0x8b3   :  { %v2720_v61 = vpop.eup %2719 }
 0x8ef   :  { %v1369_v45 = vpop.permute.xlu1 %1368 }
 0x8f0   :  { %v3451_v47 = vadd.f32 %v1369_v45, %v1365_v50  ;;  %v3556_v50 = vld [vmem:[#allocation3 + $0x60] sm:$0xff] }
 0x8f2   :  { %2721 = vtanh.f32 %v3451_v47  ;;  %v1645_v45 = vrot.slane %v3451_v47, 6 }
 0x8f3   :  { %2723 = vpow2.f32 %v2539_v23 }
 0x8ff   :  { %v2722_v10 = vpop.eup %2721 }
 0x900   :  { %v1373_v22 = vmul.f32 %v2722_v10, %v2720_v61  ;;  %v2724_v24 = vpop.eup %2723 }
 0x901   :  { %v1256_v25 = vadd.f32 1.0, %v2724_v24 }
 0x902   :  { %1375 = vrot.lane.b32.xlu1 %v1373_v22, %s2887_s2 }
 0x903   :  { %2725 = vrcp.f32 %v1256_v25 }
 0x910   :  { %v2726_v31 = vpop.eup %2725 }
 0x917   :  { %v1266_v28 = vpop.permute.xlu0 %1265 }
 0x918   :  { %v3456_v29 = vadd.f32 %v1266_v28, %v1262_v26 }
 0x91a   :  { %2727 = vtanh.f32 %v3456_v29 }
 0x927   :  { %v2728_v32 = vpop.eup %2727 }
 0x928   :  { %v1270_v33 = vmul.f32 %v2728_v32, %v2726_v31 }
 0x92a   :  { %1272 = vrot.lane.b32.xlu0 %v1270_v33, %s2887_s2 }
 0x974   :  { %v1376_v34 = vpop.permute.xlu1 %1375 }
 0x975   :  { %2543 = vmatmul.mubr.msk.f32.vlgmr.msra.gmra.mxu1 %vm251_vm2, %v1376_v34 }
 0x976   :  { %1569 = vmatpush1.msra.mxu1 %v3144_v15  ;;  %1616 = vmatprep.mubr.f32.mxu1 %v3914_v16  ;;  %v3477_v15 = vld [vmem:[#allocation3 + $0xf8] sm:$0xff] }
 0x977   :  { %1570 = vmatprep.subr.mxu1 %v3149_v58 }
 0x978   :  { %1571 = vmatpush1.msra.mxu1 %v3155_v17  ;;  %v3481_v17 = vld [vmem:[#allocation3 + $0xf0] sm:$0xff] }
 0x979   :  { %1572 = vmatprep.subr.mxu1 %v3162_v18  ;;  %v3485_v18 = vld [vmem:[#allocation3 + $0xd8] sm:$0xff] }
 0x97a   :  { %1573 = vmatpush1.msra.mxu1 %v3168_v19  ;;  %v3488_v19 = vld [vmem:[#allocation3 + $0xd0] sm:$0xff] }
 0x97b   :  { %1574 = vmatprep.subr.mxu1 %v3174_v21  ;;  %v3491_v21 = vld [vmem:[#allocation3 + $0xb8] sm:$0xff] }
 0x97c   :  { %1575 = vmatpush1.msra.mxu1 %v3180_v7  ;;  %v3494_v7 = vld [vmem:[#allocation3 + $0xb0] sm:$0xff] }
 0x97d   :  { %1576 = vmatprep.subr.mxu1 %v3186_v53  ;;  %v3497_v53 = vld [vmem:[#allocation3 + $0x98] sm:$0xff] }
 0x97e   :  { %1577 = vmatpush1.msra.mxu1 %v3192_v54  ;;  %v3500_v54 = vld [vmem:[#allocation3 + $0x90] sm:$0xff] }
 0x97f   :  { %1578 = vmatprep.subr.mxu1 %v3198_v55  ;;  %v3503_v55 = vld [vmem:[#allocation3 + $0x78] sm:$0xff] }
 0x980   :  { %1579 = vmatpush1.msra.mxu1 %v3204_v56  ;;  %v3506_v56 = vld [vmem:[#allocation3 + $0x70] sm:$0xff] }
 0x981   :  { %1580 = vmatprep.subr.mxu1 %v3210_v57  ;;  %v3509_v57 = vld [vmem:[#allocation3 + $0x58] sm:$0xff] }
 0x982   :  { %1581 = vmatpush1.msra.mxu1 %v3216_v62  ;;  %v3512_v62 = vld [vmem:[#allocation3 + $0x50] sm:$0xff] }
 0x983   :  { %1582 = vmatprep.subr.mxu1 %v3222_v6  ;;  %v3515_v6 = vld [vmem:[#allocation3 + $0x38] sm:$0xff] }
 0x984   :  { %1583 = vmatpush1.msra.mxu1 %v3228_v13  ;;  %v3518_v13 = vld [vmem:[#allocation3 + $0x30] sm:$0xff] }
 0x985   :  { %1749 = vmatprep.subr.mxu1 %v3477_v15 }
 0x99c   :  { %v1273_v58 = vpop.permute.xlu0 %1272 }
 0x99d   :  { %2540 = vmatmul.mubr.msk.f32.vlgmr.msra.gmra.mxu0 %vm251_vm2, %v1273_v58 }
 0x99e   :  { %1467 = vmatpush1.msra.mxu0 %v3481_v17  ;;  %1514 = vmatprep.mubr.f32.mxu0 %v3914_v16 }
 0x99f   :  { %1468 = vmatprep.subr.mxu0 %v3485_v18 }
 0x9a0   :  { %1469 = vmatpush1.msra.mxu0 %v3488_v19 }
 0x9a1   :  { %1470 = vmatprep.subr.mxu0 %v3491_v21 }
 0x9a2   :  { %1471 = vmatpush1.msra.mxu0 %v3494_v7 }
 0x9a3   :  { %1472 = vmatprep.subr.mxu0 %v3497_v53 }
 0x9a4   :  { %1473 = vmatpush1.msra.mxu0 %v3500_v54 }
 0x9a5   :  { %1474 = vmatprep.subr.mxu0 %v3503_v55 }
 0x9a6   :  { %1475 = vmatpush1.msra.mxu0 %v3506_v56 }
 0x9a7   :  { %1476 = vmatprep.subr.mxu0 %v3509_v57 }
 0x9a8   :  { %1477 = vmatpush1.msra.mxu0 %v3512_v62 }
 0x9a9   :  { %1478 = vmatprep.subr.mxu0 %v3515_v6 }
 0x9aa   :  { %1479 = vmatpush1.msra.mxu0 %v3518_v13 }
 0x9ab   :  { %1480 = vmatprep.subr.mxu0 %v3521_v8 }
 0x9ac   :  { %1481 = vmatpush1.msra.mxu0 %v3524_v35 }
 0x9ad   :  { %2544 = vmatmul.mubr.msk.f32.vlgmr.msra.gmra.mxu0 %vm251_vm2, %v1376_v34  ;;  %1678 = vmatprep.subr.mxu0 %v3528_v36 }
 0x9ae   :  { %1679 = vmatpush1.msra.mxu0 %v3531_v38  ;;  %1726 = vmatprep.mubr.f32.mxu0 %v3914_v16 }
 0x9af   :  { %1680 = vmatprep.subr.mxu0 %v3535_v39 }
 0x9b0   :  { %1681 = vmatpush1.msra.mxu0 %v3538_v40 }
 0x9b1   :  { %1682 = vmatprep.subr.mxu0 %v3541_v41 }
 0x9b2   :  { %1683 = vmatpush1.msra.mxu0 %v3544_v43 }
 0x9b3   :  { %1684 = vmatprep.subr.mxu0 %v3547_v44 }
 0x9b4   :  { %1685 = vmatpush1.msra.mxu0 %v3550_v46 }
 0x9b5   :  { %1686 = vmatprep.subr.mxu0 %v3553_v48 }
 0x9b6   :  { %1687 = vmatpush1.msra.mxu0 %v3556_v50 }
 0x9b7   :  { %1688 = vmatprep.subr.mxu0 %v3559_v52 }
 0x9b8   :  { %1689 = vmatpush1.msra.mxu0 %v3562_v60 }
 0x9b9   :  { %1690 = vmatprep.subr.mxu0 %v3565_v42 }
 0x9ba   :  { %1691 = vmatpush1.msra.mxu0 %v3568_v0 }
 0x9bb   :  { %1692 = vmatprep.subr.mxu0 %v3571_v63 }
 0x9bc   :  { %1693 = vmatpush1.msra.mxu0 %v3574_v11 }
 0x9bd   :  { %1851 = vmatprep.subr.mxu0 %v3930_v27 }
 0xa35   :  { %v1445_v2 = vpop.f32.mrf.mxu1 }
 0xa36   :  { %v1625_v1 = vrot.slane %v1445_v2, 6 }
 0xa37   :  { %v1447_v59 = vpop.f32.mrf.mxu1 }
 0xa38   :  { %v1629_v3 = vadd.f32 %v1625_v1, %v3438_v30  ;;  %v1626_v9 = vrot.slane %v1447_v59, 6 }
 0xa3a   :  { %v2548_v51 = vmul.f32 -1.442695, %v1629_v3  ;;  %v1630_v5 = vadd.f32 %v1626_v9, %v3443_v37 }
 0xa3c   :  { %2729 = vpow2.f32 %v2548_v51  ;;  %v2549_v3 = vmul.f32 -1.442695, %v1630_v5 }
 0xa3d   :  { %2731 = vtanh.f32 %v1630_v5 }
 0xa49   :  { %v2730_v12 = vpop.eup %2729 }
 0xa4a   :  { %v1637_v4 = vadd.f32 1.0, %v2730_v12  ;;  %v2732_v49 = vpop.eup %2731 }
 0xa4c   :  { %2733 = vrcp.f32 %v1637_v4 }
 0xa59   :  { %v2734_v61 = vpop.eup %2733 }
 0xa5a   :  { %v1648_v10 = vmul.f32 %v2734_v61, %v2732_v49  ;;  %v1647_v27 = vmul.f32 %v2734_v61, %v1645_v45 }
 0xa5c   :  { %1650 = vrot.lane.b32.xlu1 %v1648_v10, %s2887_s2 }
 0xa5d   :  { %v1342_v22 = vpop.f32.mrf.mxu0 }
 0xa5f   :  { %v1344_v23 = vpop.f32.mrf.mxu0 }
 0xa6d   :  { %v1516_v24 = vpop.f32.mrf.mxu0 }
 0xa6e   :  { %v1521_v25 = vadd.f32 %v1516_v24, %v1342_v22 }
 0xa6f   :  { %v1518_v31 = vpop.f32.mrf.mxu0 }
 0xa70   :  { %v1523_v26 = vadd.f32 %v1521_v25, %v3915_v14  ;;  %v1522_v32 = vadd.f32 %v1518_v31, %v1344_v23 }
 0xa72   :  { %v2545_v28 = vmul.f32 -1.442695, %v1523_v26  ;;  %v1524_v33 = vadd.f32 %v1522_v32, %v3917_v20  ;;  %v3598_v32 = vld [vmem:[%s3870_s4 + $0x70] sm:$0xff] }
 0xa74   :  { %2735 = vpow2.f32 %v2545_v28  ;;  %v2546_v10 = vmul.f32 -1.442695, %v1524_v33 }
 0xa75   :  { %2737 = vtanh.f32 %v1524_v33  ;;  %v3611_v33 = vld [vmem:[%s3870_s4 + $0x60] sm:$0xff] }
 0xa81   :  { %v2736_v34 = vpop.eup %2735 }
 0xa82   :  { %v1531_v58 = vadd.f32 1.0, %v2736_v34  ;;  %v2738_v47 = vpop.eup %2737  ;;  %v3617_v34 = vld [vmem:[%s3870_s4 + $0x58] sm:$0xff] }
 0xa84   :  { %2739 = vrcp.f32 %v1531_v58  ;;  %v3623_v58 = vld [vmem:[%s3870_s4 + $0x50] sm:$0xff] }
 0xa85   :  { %2741 = vpow2.f32 %v2549_v3  ;;  %v3647_v3 = vld [vmem:[%s3870_s4 + $0x30] sm:$0xff] }
 0xa91   :  { %v2740_v2 = vpop.eup %2739 }
 0xa92   :  { %v1539_v1 = vmul.f32 %v2740_v2, %v2738_v47  ;;  %v2742_v51 = vpop.eup %2741  ;;  %v1538_v5 = vmul.f32 %v2740_v2, %v3456_v29  ;;  %v3605_v29 = vld [vmem:[%s3870_s4 + $0x68] sm:$0xff]  ;;  %v3635_v2 = vld [vmem:[%s3870_s4 + $0x40] sm:$0xff] }
 0xa93   :  { %v1638_v59 = vadd.f32 1.0, %v2742_v51  ;;  %v3629_v47 = vld [vmem:[%s3870_s4 + $0x48] sm:$0xff] }
 0xa94   :  { %1541 = vrot.lane.b32.xlu0 %v1539_v1, %s2887_s2  ;;  %v3641_v1 = vld [vmem:[%s3870_s4 + $0x38] sm:$0xff]  ;;  %v3653_v51 = vld [vmem:[%s3870_s4 + $0x28] sm:$0xff] }
 0xa95   :  { %2743 = vrcp.f32 %v1638_v59  ;;  %v3659_v59 = vld [vmem:[%s3870_s4 + $0x20] sm:$0xff] }
 0xaa2   :  { %v2744_v4 = vpop.eup %2743 }
 0xace   :  { %v1651_v9 = vpop.permute.xlu1 %1650 }
 0xacf   :  { %v3585_v12 = vadd.f32 %v1651_v9, %v1647_v27  ;;  %v3665_v9 = vld [vmem:[%s3870_s4 + $0x18] sm:$0xff] }
 0xad1   :  { %2745 = vtanh.f32 %v3585_v12 }
 0xad2   :  { %2747 = vpow2.f32 %v2546_v10 }
 0xade   :  { %v2746_v49 = vpop.eup %2745 }
 0xadf   :  { %v1655_v45 = vmul.f32 %v2746_v49, %v2744_v4  ;;  %v2748_v22 = vpop.eup %2747  ;;  %v3671_v4 = vld [vmem:[%s3870_s4 + $0x10] sm:$0xff]  ;;  %v3677_v49 = vld [vmem:[%s3870_s4 + $0x8] sm:$0xff] }
 0xae0   :  { %v1532_v23 = vadd.f32 1.0, %v2748_v22 }
 0xae1   :  { %v1657_v61 = vrot.slane %v1655_v45, 2  ;;  %v3683_v45 = vld [vmem:[%s3870_s4] sm:$0xff] }
 0xae2   :  { %2749 = vrcp.f32 %v1532_v23 }
 0xae3   :  { %1658 = vrot.lane.b32.xlu1 %v1657_v61, %s2887_s2 }
 0xaef   :  { %v2750_v27 = vpop.eup %2749 }
 0xb06   :  { %v1542_v24 = vpop.permute.xlu0 %1541 }
 0xb07   :  { %v3590_v25 = vadd.f32 %v1542_v24, %v1538_v5 }
 0xb09   :  { %2751 = vtanh.f32 %v3590_v25 }
 0xb16   :  { %v2752_v26 = vpop.eup %2751 }
 0xb17   :  { %v1546_v28 = vmul.f32 %v2752_v26, %v2750_v27 }
 0xb19   :  { %1548 = vrot.lane.b32.xlu0 %v1546_v28, %s2887_s2 }
 0xb55   :  { %v1659_v31 = vpop.permute.xlu1 %1658 }
 0xb56   :  { %2550 = vmatmul.mubr.msk.f32.vlgmr.msra.gmra.mxu0 %vm251_vm2, %v1659_v31 }
 0xb57   :  { %1852 = vmatpush1.msra.mxu0 %v3598_v32  ;;  %1899 = vmatprep.mubr.f32.mxu0 %v3914_v16 }
 0xb58   :  { %1853 = vmatprep.subr.mxu0 %v3605_v29 }
 0xb59   :  { %1854 = vmatpush1.msra.mxu0 %v3611_v33 }
 0xb5a   :  { %1855 = vmatprep.subr.mxu0 %v3617_v34 }
 0xb5b   :  { %1856 = vmatpush1.msra.mxu0 %v3623_v58 }
 0xb5c   :  { %1857 = vmatprep.subr.mxu0 %v3629_v47 }
 0xb5d   :  { %1858 = vmatpush1.msra.mxu0 %v3635_v2 }
 0xb5e   :  { %1859 = vmatprep.subr.mxu0 %v3641_v1 }
 0xb5f   :  { %1860 = vmatpush1.msra.mxu0 %v3647_v3 }
 0xb60   :  { %1861 = vmatprep.subr.mxu0 %v3653_v51 }
 0xb61   :  { %1862 = vmatpush1.msra.mxu0 %v3659_v59 }
 0xb62   :  { %1863 = vmatprep.subr.mxu0 %v3665_v9 }
 0xb63   :  { %1864 = vmatpush1.msra.mxu0 %v3671_v4 }
 0xb64   :  { %1865 = vmatprep.subr.mxu0 %v3677_v49 }
 0xb65   :  { %1866 = vmatpush1.msra.mxu0 %v3683_v45 }
 0xb66   :  { %2032 = vmatprep.subr.mxu0 %v3477_v15 }
 0xb8b   :  { %v1549_v61 = vpop.permute.xlu0 %1548 }
 0xb8c   :  { %2547 = vmatmul.mubr.msk.f32.vlgmr.msra.gmra.mxu1 %vm251_vm2, %v1549_v61 }
 0xb8d   :  { %1750 = vmatpush1.msra.mxu1 %v3481_v17  ;;  %1797 = vmatprep.mubr.f32.mxu1 %v3914_v16 }
 0xb8e   :  { %1751 = vmatprep.subr.mxu1 %v3485_v18 }
 0xb8f   :  { %1752 = vmatpush1.msra.mxu1 %v3488_v19 }
 0xb90   :  { %1753 = vmatprep.subr.mxu1 %v3491_v21 }
 0xb91   :  { %1754 = vmatpush1.msra.mxu1 %v3494_v7 }
 0xb92   :  { %1755 = vmatprep.subr.mxu1 %v3497_v53 }
 0xb93   :  { %1756 = vmatpush1.msra.mxu1 %v3500_v54 }
 0xb94   :  { %1757 = vmatprep.subr.mxu1 %v3503_v55 }
 0xb95   :  { %1758 = vmatpush1.msra.mxu1 %v3506_v56 }
 0xb96   :  { %1759 = vmatprep.subr.mxu1 %v3509_v57 }
 0xb97   :  { %1760 = vmatpush1.msra.mxu1 %v3512_v62 }
 0xb98   :  { %1761 = vmatprep.subr.mxu1 %v3515_v6 }
 0xb99   :  { %1762 = vmatpush1.msra.mxu1 %v3518_v13 }
 0xb9a   :  { %1763 = vmatprep.subr.mxu1 %v3521_v8 }
 0xb9b   :  { %1764 = vmatpush1.msra.mxu1 %v3524_v35 }
 0xb9c   :  { %2551 = vmatmul.mubr.msk.f32.vlgmr.msra.gmra.mxu1 %vm251_vm2, %v1659_v31  ;;  %1961 = vmatprep.subr.mxu1 %v3528_v36  ;;  %v2860_v36 = vld [vmem:[%s3870_s4 + $0x78] sm:$0xff] }
 0xb9d   :  { %1962 = vmatpush1.msra.mxu1 %v3531_v38  ;;  %2009 = vmatprep.mubr.f32.mxu1 %v3914_v16 }
 0xb9e   :  { %1963 = vmatprep.subr.mxu1 %v3535_v39 }
 0xb9f   :  { %1964 = vmatpush1.msra.mxu1 %v3538_v40 }
 0xba0   :  { %1965 = vmatprep.subr.mxu1 %v3541_v41 }
 0xba1   :  { %1966 = vmatpush1.msra.mxu1 %v3544_v43 }
 0xba2   :  { %1967 = vmatprep.subr.mxu1 %v3547_v44 }
 0xba3   :  { %1968 = vmatpush1.msra.mxu1 %v3550_v46 }
 0xba4   :  { %1969 = vmatprep.subr.mxu1 %v3553_v48 }
 0xba5   :  { %1970 = vmatpush1.msra.mxu1 %v3556_v50 }
 0xba6   :  { %1971 = vmatprep.subr.mxu1 %v3559_v52 }
 0xba7   :  { %1972 = vmatpush1.msra.mxu1 %v3562_v60  ;;  %v1928_v60 = vrot.slane %v3585_v12, 6 }
 0xba8   :  { %1973 = vmatprep.subr.mxu1 %v3565_v42 }
 0xba9   :  { %1974 = vmatpush1.msra.mxu1 %v3568_v0 }
 0xbaa   :  { %1975 = vmatprep.subr.mxu1 %v3571_v63 }
 0xbab   :  { %1976 = vmatpush1.msra.mxu1 %v3574_v11 }
 0xbac   :  { %2134 = vmatprep.subr.mxu1 %v2860_v36 }
 0xc16   :  { %v1728_v38 = vpop.f32.mrf.mxu0 }
 0xc17   :  { %v1908_v39 = vrot.slane %v1728_v38, 4 }
 0xc18   :  { %v1730_v43 = vpop.f32.mrf.mxu0 }
 0xc19   :  { %v1912_v40 = vadd.f32 %v1908_v39, %v3438_v30  ;;  %v1909_v44 = vrot.slane %v1730_v43, 4 }
 0xc1b   :  { %v2555_v41 = vmul.f32 -1.442695, %v1912_v40  ;;  %v1913_v46 = vadd.f32 %v1909_v44, %v3443_v37 }
 0xc1d   :  { %2753 = vpow2.f32 %v2555_v41  ;;  %v2556_v39 = vmul.f32 -1.442695, %v1913_v46 }
 0xc1e   :  { %2755 = vtanh.f32 %v1913_v46 }
 0xc2a   :  { %v2754_v48 = vpop.eup %2753 }
 0xc2b   :  { %v1920_v50 = vadd.f32 1.0, %v2754_v48  ;;  %v2756_v52 = vpop.eup %2755 }
 0xc2d   :  { %2757 = vrcp.f32 %v1920_v50 }
 0xc3a   :  { %v2758_v42 = vpop.eup %2757 }
 0xc3b   :  { %v1931_v0 = vmul.f32 %v2758_v42, %v2756_v52  ;;  %v1930_v63 = vmul.f32 %v2758_v42, %v1928_v60 }
 0xc3d   :  { %1933 = vrot.lane.b32.xlu1 %v1931_v0, %s2887_s2 }
 0xc4c   :  { %v1618_v11 = vpop.f32.mrf.mxu1 }
 0xc4e   :  { %v1620_v10 = vpop.f32.mrf.mxu1 }
 0xc5c   :  { %v1799_v22 = vpop.f32.mrf.mxu1 }
 0xc5d   :  { %v1804_v23 = vadd.f32 %v1799_v22, %v1618_v11 }
 0xc5e   :  { %v1801_v27 = vpop.f32.mrf.mxu1 }
 0xc5f   :  { %v1806_v5 = vadd.f32 %v1804_v23, %v3915_v14  ;;  %v1805_v26 = vadd.f32 %v1801_v27, %v1620_v10 }
 0xc61   :  { %v2552_v24 = vmul.f32 -1.442695, %v1806_v5  ;;  %v1807_v28 = vadd.f32 %v1805_v26, %v3917_v20 }
 0xc63   :  { %2759 = vpow2.f32 %v2552_v24  ;;  %v2553_v42 = vmul.f32 -1.442695, %v1807_v28 }
 0xc64   :  { %2761 = vtanh.f32 %v1807_v28 }
 0xc70   :  { %v2760_v31 = vpop.eup %2759 }
 0xc71   :  { %v1814_v61 = vadd.f32 1.0, %v2760_v31  ;;  %v2762_v12 = vpop.eup %2761 }
 0xc73   :  { %2763 = vrcp.f32 %v1814_v61 }
 0xc74   :  { %2765 = vpow2.f32 %v2556_v39 }
 0xc80   :  { %v2764_v36 = vpop.eup %2763 }
 0xc81   :  { %v1822_v38 = vmul.f32 %v2764_v36, %v2762_v12  ;;  %v2766_v40 = vpop.eup %2765  ;;  %v1821_v46 = vmul.f32 %v2764_v36, %v3590_v25 }
 0xc82   :  { %v1921_v41 = vadd.f32 1.0, %v2766_v40 }
 0xc83   :  { %1824 = vrot.lane.b32.xlu0 %v1822_v38, %s2887_s2 }
 0xc84   :  { %2767 = vrcp.f32 %v1921_v41 }
 0xc91   :  { %v2768_v48 = vpop.eup %2767 }
 0xcaf   :  { %v1934_v43 = vpop.permute.xlu1 %1933 }
 0xcb0   :  { %v3732_v44 = vadd.f32 %v1934_v43, %v1930_v63 }
 0xcb2   :  { %2769 = vtanh.f32 %v3732_v44 }
 0xcb3   :  { %2771 = vpow2.f32 %v2553_v42 }
 0xcbf   :  { %v2770_v50 = vpop.eup %2769 }
 0xcc0   :  { %v1938_v52 = vmul.f32 %v2770_v50, %v2768_v48  ;;  %v2772_v0 = vpop.eup %2771 }
 0xcc1   :  { %v1815_v11 = vadd.f32 1.0, %v2772_v0 }
 0xcc2   :  { %v1940_v60 = vrot.slane %v1938_v52, 4 }
 0xcc3   :  { %2773 = vrcp.f32 %v1815_v11 }
 0xcc4   :  { %1941 = vrot.lane.b32.xlu1 %v1940_v60, %s2887_s2 }
 0xcd0   :  { %v2774_v63 = vpop.eup %2773 }
 0xcf5   :  { %v1825_v10 = vpop.permute.xlu0 %1824 }
 0xcf6   :  { %v3737_v22 = vadd.f32 %v1825_v10, %v1821_v46 }
 0xcf8   :  { %2775 = vtanh.f32 %v3737_v22 }
 0xd05   :  { %v2776_v23 = vpop.eup %2775 }
 0xd06   :  { %v1829_v5 = vmul.f32 %v2776_v23, %v2774_v63 }
 0xd08   :  { %1831 = vrot.lane.b32.xlu0 %v1829_v5, %s2887_s2 }
 0xd36   :  { %v1942_v24 = vpop.permute.xlu1 %1941 }
 0xd37   :  { %2557 = vmatmul.mubr.msk.f32.vlgmr.msra.gmra.mxu1 %vm251_vm2, %v1942_v24 }
 0xd38   :  { %2135 = vmatpush1.msra.mxu1 %v3598_v32  ;;  %2182 = vmatprep.mubr.f32.mxu1 %v3914_v16 }
 0xd39   :  { %2136 = vmatprep.subr.mxu1 %v3605_v29 }
 0xd3a   :  { %2137 = vmatpush1.msra.mxu1 %v3611_v33 }
 0xd3b   :  { %2138 = vmatprep.subr.mxu1 %v3617_v34 }
 0xd3c   :  { %2139 = vmatpush1.msra.mxu1 %v3623_v58 }
 0xd3d   :  { %2140 = vmatprep.subr.mxu1 %v3629_v47 }
 0xd3e   :  { %2141 = vmatpush1.msra.mxu1 %v3635_v2 }
 0xd3f   :  { %2142 = vmatprep.subr.mxu1 %v3641_v1 }
 0xd40   :  { %2143 = vmatpush1.msra.mxu1 %v3647_v3 }
 0xd41   :  { %2144 = vmatprep.subr.mxu1 %v3653_v51 }
 0xd42   :  { %2145 = vmatpush1.msra.mxu1 %v3659_v59 }
 0xd43   :  { %2146 = vmatprep.subr.mxu1 %v3665_v9 }
 0xd44   :  { %2147 = vmatpush1.msra.mxu1 %v3671_v4 }
 0xd45   :  { %2148 = vmatprep.subr.mxu1 %v3677_v49 }
 0xd46   :  { %2149 = vmatpush1.msra.mxu1 %v3683_v45 }
 0xd47   :  { %2585 = vmatprep.subr.mxu1 %v3914_v16 }
 0xd7a   :  { %v1832_v25 = vpop.permute.xlu0 %1831 }
 0xd7b   :  { %2554 = vmatmul.mubr.msk.f32.vlgmr.msra.gmra.mxu0 %vm251_vm2, %v1832_v25 }
 0xd7c   :  { %2033 = vmatpush1.msra.mxu0 %v3481_v17  ;;  %2080 = vmatprep.mubr.f32.mxu0 %v3914_v16 }
 0xd7d   :  { %2034 = vmatprep.subr.mxu0 %v3485_v18 }
 0xd7e   :  { %2035 = vmatpush1.msra.mxu0 %v3488_v19 }
 0xd7f   :  { %2036 = vmatprep.subr.mxu0 %v3491_v21 }
 0xd80   :  { %2037 = vmatpush1.msra.mxu0 %v3494_v7 }
 0xd81   :  { %2038 = vmatprep.subr.mxu0 %v3497_v53 }
 0xd82   :  { %2039 = vmatpush1.msra.mxu0 %v3500_v54 }
 0xd83   :  { %2040 = vmatprep.subr.mxu0 %v3503_v55 }
 0xd84   :  { %2041 = vmatpush1.msra.mxu0 %v3506_v56 }
 0xd85   :  { %2042 = vmatprep.subr.mxu0 %v3509_v57 }
 0xd86   :  { %2043 = vmatpush1.msra.mxu0 %v3512_v62 }
 0xd87   :  { %2044 = vmatprep.subr.mxu0 %v3515_v6 }
 0xd88   :  { %2045 = vmatpush1.msra.mxu0 %v3518_v13 }
 0xd89   :  { %2046 = vmatprep.subr.mxu0 %v3521_v8 }
 0xd8a   :  { %2047 = vmatpush1.msra.mxu0 %v3524_v35 }
 0xd8b   :  { %2558 = vmatmul.mubr.msk.f32.vlgmr.msra.gmra.mxu0 %vm251_vm2, %v1942_v24  ;;  %2244 = vmatprep.subr.mxu0 %v3477_v15 }
 0xd8c   :  { %2245 = vmatpush1.msra.mxu0 %v3481_v17  ;;  %2292 = vmatprep.mubr.f32.mxu0 %v3914_v16 }
 0xd8d   :  { %2246 = vmatprep.subr.mxu0 %v3485_v18 }
 0xd8e   :  { %2247 = vmatpush1.msra.mxu0 %v3488_v19 }
 0xd8f   :  { %2248 = vmatprep.subr.mxu0 %v3491_v21 }
 0xd90   :  { %2249 = vmatpush1.msra.mxu0 %v3494_v7 }
 0xd91   :  { %2250 = vmatprep.subr.mxu0 %v3497_v53 }
 0xd92   :  { %2251 = vmatpush1.msra.mxu0 %v3500_v54 }
 0xd93   :  { %2252 = vmatprep.subr.mxu0 %v3503_v55 }
 0xd94   :  { %2253 = vmatpush1.msra.mxu0 %v3506_v56 }
 0xd95   :  { %2254 = vmatprep.subr.mxu0 %v3509_v57  ;;  %v2211_v57 = vrot.slane %v3732_v44, 6 }
 0xd96   :  { %2255 = vmatpush1.msra.mxu0 %v3512_v62 }
 0xd97   :  { %2256 = vmatprep.subr.mxu0 %v3515_v6 }
 0xd98   :  { %2257 = vmatpush1.msra.mxu0 %v3518_v13 }
 0xd99   :  { %2258 = vmatprep.subr.mxu0 %v3521_v8 }
 0xd9a   :  { %2259 = vmatpush1.msra.mxu0 %v3524_v35 }
 0xd9b   :  { %2604 = vmatprep.subr.mxu0 %v3914_v16 }
 0xdf7   :  { %v2011_v15 = vpop.f32.mrf.mxu1 }
 0xdf8   :  { %v2191_v17 = vrot.slane %v2011_v15, 2 }
 0xdf9   :  { %v2013_v21 = vpop.f32.mrf.mxu1 }
 0xdfa   :  { %v2195_v18 = vadd.f32 %v2191_v17, %v3438_v30  ;;  %v2192_v7 = vrot.slane %v2013_v21, 2  ;;  %v2331_v17 = vld [vmem:[%s3872_s6 + $0x30] sm:$0xff] }
 0xdfb   :  { %v2327_v21 = vld [vmem:[%s3872_s6 + $0x10] sm:$0xff] }
 0xdfc   :  { %v2562_v19 = vmul.f32 -1.442695, %v2195_v18  ;;  %v2196_v53 = vadd.f32 %v2192_v7, %v3443_v37  ;;  %v2329_v18 = vld [vmem:[%s3872_s6 + $0x20] sm:$0xff]  ;;  %v2326_v7 = vld [vmem:[%s3872_s6 + $0x8] sm:$0xff] }
 0xdfe   :  { %2777 = vpow2.f32 %v2562_v19  ;;  %v2563_v59 = vmul.f32 -1.442695, %v2196_v53  ;;  %v2328_v19 = vld [vmem:[%s3872_s6 + $0x18] sm:$0xff] }
 0xdff   :  { %2779 = vtanh.f32 %v2196_v53  ;;  %v2325_v53 = vld [vmem:[%s3872_s6] sm:$0xff] }
 0xe0b   :  { %v2778_v54 = vpop.eup %2777 }
 0xe0c   :  { %v2203_v55 = vadd.f32 1.0, %v2778_v54  ;;  %v2780_v56 = vpop.eup %2779 }
 0xe0e   :  { %2781 = vrcp.f32 %v2203_v55 }
 0xe1b   :  { %v2782_v62 = vpop.eup %2781 }
 0xe1c   :  { %v2214_v6 = vmul.f32 %v2782_v62, %v2780_v56  ;;  %v2213_v13 = vmul.f32 %v2782_v62, %v2211_v57 }
 0xe1e   :  { %2216 = vrot.lane.b32.xlu0 %v2214_v6, %s2887_s2 }
 0xe3b   :  { %v1901_v8 = vpop.f32.mrf.mxu0 }
 0xe3d   :  { %v1903_v30 = vpop.f32.mrf.mxu0 }
 0xe4b   :  { %v2082_v35 = vpop.f32.mrf.mxu0 }
 0xe4c   :  { %v2087_v32 = vadd.f32 %v2082_v35, %v1901_v8 }
 0xe4d   :  { %v2084_v37 = vpop.f32.mrf.mxu0 }
 0xe4e   :  { %v2089_v29 = vadd.f32 %v2087_v32, %v3915_v14  ;;  %v2088_v34 = vadd.f32 %v2084_v37, %v1903_v30  ;;  %v2416_v37 = vld [vmem:[%s3874_s8] sm:$0xff] }
 0xe50   :  { %v2559_v33 = vmul.f32 -1.442695, %v2089_v29  ;;  %v2090_v58 = vadd.f32 %v2088_v34, %v3917_v20  ;;  %v2418_v29 = vld [vmem:[%s3874_s8 + $0x10] sm:$0xff]  ;;  %v2567_v34 = vld [vmem:[%s3873_s7] ss:$0 sm:$0xff] }
 0xe52   :  { %2783 = vpow2.f32 %v2559_v33  ;;  %v2560_v61 = vmul.f32 -1.442695, %v2090_v58  ;;  %v2417_v33 = vld [vmem:[%s3874_s8 + $0x8] sm:$0xff] }
 0xe53   :  { %2785 = vtanh.f32 %v2090_v58 }
 0xe5f   :  { %v2784_v47 = vpop.eup %2783 }
 0xe60   :  { %v2097_v2 = vadd.f32 1.0, %v2784_v47  ;;  %v2786_v1 = vpop.eup %2785 }
 0xe62   :  { %2787 = vrcp.f32 %v2097_v2 }
 0xe63   :  { %2789 = vpow2.f32 %v2563_v59 }
 0xe6f   :  { %v2788_v3 = vpop.eup %2787 }
 0xe70   :  { %v2105_v51 = vmul.f32 %v2788_v3, %v2786_v1  ;;  %v2790_v9 = vpop.eup %2789  ;;  %v2104_v38 = vmul.f32 %v2788_v3, %v3737_v22  ;;  %v2569_v3 = vld [vmem:[#allocation2] ss:$0 sm:$0xff] }
 0xe71   :  { %v2204_v4 = vadd.f32 1.0, %v2790_v9 }
 0xe72   :  { %2107 = vrot.lane.b32.xlu1 %v2105_v51, %s2887_s2 }
 0xe73   :  { %2791 = vrcp.f32 %v2204_v4 }
 0xe80   :  { %v2792_v27 = vpop.eup %2791 }
 0xe90   :  { %v2217_v49 = vpop.permute.xlu0 %2216 }
 0xe91   :  { %v2219_v45 = vadd.f32 %v2217_v49, %v2213_v13  ;;  %v2419_v13 = vld [vmem:[%s3874_s8 + $0x18] sm:$0xff] }
 0xe93   :  { %2793 = vtanh.f32 %v2219_v45 }
 0xe94   :  { %2795 = vpow2.f32 %v2560_v61 }
 0xea0   :  { %v2794_v26 = vpop.eup %2793 }
 0xea1   :  { %v2221_v28 = vmul.f32 %v2794_v26, %v2792_v27  ;;  %v2796_v12 = vpop.eup %2795 }
 0xea2   :  { %v2098_v36 = vadd.f32 1.0, %v2796_v12 }
 0xea3   :  { %v2223_v31 = vrot.slane %v2221_v28, 6 }
 0xea4   :  { %2797 = vrcp.f32 %v2098_v36 }
 0xea5   :  { %2224 = vrot.lane.b32.xlu1 %v2223_v31, %s2887_s2 }
 0xeb1   :  { %v2798_v41 = vpop.eup %2797 }
 0xee4   :  { %v2108_v39 = vpop.permute.xlu1 %2107 }
 0xee5   :  { %v2110_v40 = vadd.f32 %v2108_v39, %v2104_v38 }
 0xee7   :  { %2799 = vtanh.f32 %v2110_v40 }
 0xef4   :  { %v2800_v43 = vpop.eup %2799 }
 0xef5   :  { %v2112_v44 = vmul.f32 %v2800_v43, %v2798_v41 }
 0xef7   :  { %2114 = vrot.lane.b32.xlu0 %v2112_v44, %s2887_s2 }
 0xf17   :  { %v2225_v48 = vpop.permute.xlu1 %2224 }
 0xf18   :  { %2564 = vmatmul.mubr.msk.f32.vlgmr.msra.gmra.mxu0 %vm251_vm2, %v2225_v48 }
 0xf19   :  { %2612 = vmatprep.mubr.msk.f32.mxu0 %vm2888_vm3, %v3914_v16  ;;  %2605 = vmatpush3.msra.mxu0 %v2419_v13 }
 0xf1a   :  { %2606 = vmatprep.subr.mxu0 %v3914_v16 }
 0xf1b   :  { %2607 = vmatpush3.msra.mxu0 %v2418_v29 }
 0xf1c   :  { %2608 = vmatprep.subr.mxu0 %v3914_v16 }
 0xf1d   :  { %2609 = vmatpush3.msra.mxu0 %v2417_v33 }
 0xf1e   :  { %2610 = vmatprep.subr.mxu0 %v3914_v16 }
 0xf1f   :  { %2611 = vmatpush3.msra.mxu0 %v2416_v37 }
 0xf69   :  { %v2115_v50 = vpop.permute.xlu0 %2114 }
 0xf6a   :  { %2561 = vmatmul.mubr.msk.f32.vlgmr.msra.gmra.mxu1 %vm251_vm2, %v2115_v50 }
 0xf6b   :  { %2601 = vmatprep.mubr.msk.f32.mxu1 %vm2888_vm3, %v3914_v16 }
 0xfd8   :  { %v2294_v52 = vpop.f32.mrf.mxu0 }
 0xfda   :  { %v2296_v10 = vpop.f32.mrf.mxu0 }
0x102a   :  { %v2184_v60 = vpop.f32.mrf.mxu1 }
0x102b   :  { %v2299_v42 = vadd.f32 %v2294_v52, %v2184_v60 }
0x102c   :  { %v2186_v46 = vpop.f32.mrf.mxu1 }
0x102d   :  { %v2301_v0 = vadd.f32 %v2299_v42, %v3915_v14  ;;  %v2300_v22 = vadd.f32 %v2296_v10, %v2186_v46  ;;  %v2332_v14 = vld [vmem:[%s3872_s6 + $0x38] sm:$0xff] }
0x102e   :  { %2586 = vmatpush3.msra.mxu1 %v2332_v14 }
0x102f   :  { %v2565_v11 = vmul.f32 -1.442695, %v2301_v0  ;;  %v2302_v63 = vadd.f32 %v2300_v22, %v3917_v20  ;;  %2587 = vmatprep.subr.mxu1 %v3914_v16  ;;  %v2330_v20 = vld [vmem:[%s3872_s6 + $0x28] sm:$0xff] }
0x1030   :  { %2588 = vmatpush3.msra.mxu1 %v2331_v17 }
0x1031   :  { %2801 = vpow2.f32 %v2565_v11  ;;  %2589 = vmatprep.subr.mxu1 %v3914_v16  ;;  %v2566_v54 = vmul.f32 -1.442695, %v2302_v63 }
0x1032   :  { %2803 = vtanh.f32 %v2302_v63  ;;  %2590 = vmatpush3.msra.mxu1 %v2330_v20 }
0x1033   :  { %2591 = vmatprep.subr.mxu1 %v3914_v16 }
0x1034   :  { %2592 = vmatpush3.msra.mxu1 %v2329_v18 }
0x1035   :  { %2593 = vmatprep.subr.mxu1 %v3914_v16 }
0x1036   :  { %2594 = vmatpush3.msra.mxu1 %v2328_v19 }
0x1037   :  { %2595 = vmatprep.subr.mxu1 %v3914_v16 }
0x1038   :  { %2596 = vmatpush3.msra.mxu1 %v2327_v21 }
0x1039   :  { %2597 = vmatprep.subr.mxu1 %v3914_v16 }
0x103a   :  { %2598 = vmatpush3.msra.mxu1 %v2326_v7 }
0x103b   :  { %2599 = vmatprep.subr.mxu1 %v3914_v16 }
0x103c   :  { %2600 = vmatpush3.msra.mxu1 %v2325_v53 }
0x103e   :  { %v2802_v23 = vpop.eup %2801 }
0x103f   :  { %v2309_v5 = vadd.f32 1.0, %v2802_v23  ;;  %v2804_v24 = vpop.eup %2803 }
0x1041   :  { %2805 = vrcp.f32 %v2309_v5 }
0x1042   :  { %2807 = vpow2.f32 %v2566_v54 }
0x104e   :  { %v2806_v25 = vpop.eup %2805 }
0x104f   :  { %v2317_v15 = vmul.f32 %v2806_v25, %v2804_v24  ;;  %v2808_v55 = vpop.eup %2807  ;;  %v2316_v57 = vmul.f32 %v2806_v25, %v2110_v40 }
0x1050   :  { %v2310_v56 = vadd.f32 1.0, %v2808_v55 }
0x1051   :  { %2319 = vrot.lane.b32.xlu0 %v2317_v15, %s2887_s2 }
0x1052   :  { %2809 = vrcp.f32 %v2310_v56 }
0x105f   :  { %v2810_v8 = vpop.eup %2809 }
0x10c3   :  { %v2320_v62 = vpop.permute.xlu0 %2319 }
0x10c4   :  { %v2322_v6 = vadd.f32 %v2320_v62, %v2316_v57 }
0x10c6   :  { %2811 = vtanh.f32 %v2322_v6 }
0x10d3   :  { %v2812_v30 = vpop.eup %2811 }
0x10d4   :  { %v2324_v35 = vmul.f32 %v2812_v30, %v2810_v8 }
0x10d6   :  { %2341 = vrot.lane.b32.xlu1 %v2324_v35, %s2887_s2 }
0x1148   :  { %v2342_v32 = vpop.permute.xlu1 %2341 }
0x1149   :  { %2602 = vmatmul.mubr.msk.f32.vlgmr.msra.gmra.mxu1 %vm251_vm2, %v2342_v32 }
0x1209   :  { %v2411_v58 = vpop.f32.mrf.mxu1 }
0x120a   :  { %v2412_v47 = vadd.f32 %v2567_v34, %v2411_v58 }
0x120b   :  { %v2603_v2 = vpop.f32.mrf.mxu1 }
0x120c   :  { %v2415_v1 = vmax.f32 %v2412_v47, 0.0 }
0x120e   :  { %2613 = vmatmul.mubr.msk.f32.vlgmr.msra.gmra.mxu0 %vm2427_vm4, %v2415_v1 }
0x12ce   :  { %v2497_v51 = vpop.f32.mrf.mxu0 }
0x12cf   :  { %v2498_v59 = vadd.f32 %v2569_v3, %v2497_v51 }
0x12d0   :  { %v2614_v9 = vpop.f32.mrf.mxu0 }
0x12d1   :  { %2502 = vst.msk [vmem:[%s3876_s10] sm:$0x3] %vm2501_vm5, %v2498_v59 }
0x12d2   :  { %2507 = vsyncpa [#allocation4], 1 }

</bundles_post_ra>
